<compile_context>
chip_gen: v5e
topology: v5e:2x2
jax: 0.10.0
libtpu: 0.0.40
codegen_flags: <defaults>
</compile_context>

<pallas_src>
import functools

import jax
import jax.numpy as jnp
from jax import lax
from jax.experimental import pallas as pl
from jax.experimental.pallas import tpu as pltpu

EPS = 1e-5


# ----------------------------------------------------------------------------
# Kernel
# ----------------------------------------------------------------------------
def _channel_stats(acc, C):
    """Per-channel mean/var of a (rows, W*C) slab (channel = lane % C).

    One pass (sum + sum-of-squares).  Both statistics ride in one (2, L) vreg so the
    cross-group lane reduction (a log-tree of circular lane rolls on the XLU) is done
    once for the pair; the result lands already broadcast back into the interleaved
    (w*C + c) lane pattern.  Requires W = L // C to be a power of 2.
    """
    rows, L = acc.shape
    W = L // C
    s = jnp.sum(acc, axis=0, keepdims=True)              # (1, L)
    q = jnp.sum(acc * acc, axis=0, keepdims=True)        # (1, L)
    sq = jnp.concatenate([s, q], axis=0)                  # (2, L): shared roll-tree
    shift = C
    while shift < L:                                      # log2(W) rolls (XLU slot)
        sq = sq + pltpu.roll(sq, shift, 1)
        shift *= 2
    inv = 1.0 / float(rows * W)
    mean = sq[0:1, :] * inv
    var = sq[1:2, :] * inv - mean * mean                  # biased variance
    return mean, var


def _encoder_kernel(H, W, Cin, Cout, use_row_selectors,
                    xh_ref, m1_ref, m2_ref, bn_ref, sel_ref, *rest):
    if use_row_selectors:
        rsel_ref, y_ref, p_ref, pad_ref = rest
    else:
        rsel_ref = None
        y_ref, p_ref, pad_ref = rest

    N = xh_ref.shape[0]
    NH = N * H
    WCi = W * Cin
    WCo = W * Cout

    def row_slab(ref, dy, width):
        # (N, H, width) slab starting at padded row `dy`, flattened to (N*H, width).
        return ref[:, dy:dy + H, :].reshape(NH, width)

    # ---- conv1: 3 banded matmuls (K = W*Cin); conv bias omitted (BN cancels it) ----
    acc = jnp.dot(row_slab(xh_ref, 0, WCi), m1_ref[0],
                  preferred_element_type=jnp.float32)
    for dy in (1, 2):
        acc = acc + jnp.dot(row_slab(xh_ref, dy, WCi), m1_ref[dy],
                            preferred_element_type=jnp.float32)

    # ---- BN1 (training-mode batch stats) + ReLU, lane-dense ----
    mean1, var1 = _channel_stats(acc, Cout)
    scale1 = bn_ref[0:1, :] * lax.rsqrt(var1 + EPS)
    y1 = jnp.maximum((acc - mean1) * scale1 + bn_ref[1:2, :], 0.0)

    # ---- stage y1 with a 1-row H halo (lane dim stays W*Cout); zero border only ----
    pad_ref[:, 0:1, :] = jnp.zeros((N, 1, WCo), jnp.float32)
    pad_ref[:, H + 1:H + 2, :] = jnp.zeros((N, 1, WCo), jnp.float32)
    pad_ref[:, 1:H + 1, :] = y1.reshape(N, H, WCo)

    # ---- conv2: 3 banded matmuls (K = W*Cout) ----
    acc2 = jnp.dot(row_slab(pad_ref, 0, WCo), m2_ref[0],
                   preferred_element_type=jnp.float32)
    for dy in (1, 2):
        acc2 = acc2 + jnp.dot(row_slab(pad_ref, dy, WCo), m2_ref[dy],
                              preferred_element_type=jnp.float32)

    # ---- BN2 + ReLU ----
    mean2, var2 = _channel_stats(acc2, Cout)
    scale2 = bn_ref[2:3, :] * lax.rsqrt(var2 + EPS)
    y2 = jnp.maximum((acc2 - mean2) * scale2 + bn_ref[3:4, :], 0.0)
    y_ref[...] = y2                                       # (N*H, W*Cout), lane-dense

    # ---- 2x2 max-pool ----
    half = NH // 2
    if use_row_selectors:
        # Fallback: tiny (N*H/2, N*H) 0/1 row selectors on the MXU.
        rmax = jnp.maximum(
            jnp.dot(rsel_ref[0], y2, preferred_element_type=jnp.float32),
            jnp.dot(rsel_ref[1], y2, preferred_element_type=jnp.float32))
    else:
        # Preferred: strided sublane reads of the just-written output.
        ev = y_ref[pl.ds(0, half, stride=2), :]
        od = y_ref[pl.ds(1, half, stride=2), :]
        rmax = jnp.maximum(ev, od)                        # (N*H/2, W*Cout)

    # Lane-direction pair max: even/odd channel-group compaction via fixed 0/1 mats.
    p_ref[...] = jnp.maximum(
        jnp.dot(rmax, sel_ref[0], preferred_element_type=jnp.float32),
        jnp.dot(rmax, sel_ref[1], preferred_element_type=jnp.float32))


# ----------------------------------------------------------------------------
# Host-side helpers (all tiny, weight-scale constants)
# ----------------------------------------------------------------------------
def _banded_weights(w, W):
    """w: (3,3,Ci,Co) HWIO -> (3, W*Ci, W*Co) banded matrices.

    M[dy][wi*Ci+ci, wo*Co+co] = w[dy, dx, ci, co] with wi = wo + dx - 1 and zero
    outside the band, i.e. the conv's padding=1 along W is folded into the weights.
    """
    _, _, Ci, Co = w.shape
    dx = jnp.arange(3)[:, None, None]
    wi = jnp.arange(W)[None, :, None]
    wo = jnp.arange(W)[None, None, :]
    band = (wi == wo + dx - 1).astype(jnp.float32)        # (3, W, W)
    m = jnp.einsum('xiw,yxcd->yicwd', band, w)            # (3, W, Ci, W, Co)
    return m.reshape(3, W * Ci, W * Co)


def _pool_lane_selectors(W, C):
    """(2, W*C, W/2*C) 0/1 matrices picking even / odd channel-groups along lanes."""
    Wp = W // 2
    wp = jnp.arange(Wp)[:, None]
    c = jnp.arange(C)[None, :]
    je = (2 * wp * C + c).reshape(-1)
    jo = ((2 * wp + 1) * C + c).reshape(-1)
    sel_e = jax.nn.one_hot(je, W * C, dtype=jnp.float32).T
    sel_o = jax.nn.one_hot(jo, W * C, dtype=jnp.float32).T
    return jnp.stack([sel_e, sel_o])


def _pool_row_selectors(N, H):
    """(2, N*H/2, N*H) 0/1 matrices picking even / odd rows (fallback path only)."""
    Hp = H // 2
    n = jnp.arange(N)[:, None]
    hp = jnp.arange(Hp)[None, :]
    base = (n * H + 2 * hp).reshape(-1)
    rsel_e = jax.nn.one_hot(base, N * H, dtype=jnp.float32)
    rsel_o = jax.nn.one_hot(base + 1, N * H, dtype=jnp.float32)
    return jnp.stack([rsel_e, rsel_o])


# ----------------------------------------------------------------------------
# Public wrapper (NCHW in / NCHW out, like the PyTorch module)
# ----------------------------------------------------------------------------
def encoder_block_forward(x_nchw, params):
    """Returns (x, p) exactly like the PyTorch encoder_block, in NCHW."""
    w1, b1, g1, be1, w2, b2, g2, be2 = params
    del b1, b2                       # exactly cancelled by training-mode BN
    N, Cin, H, W = x_nchw.shape
    Cout = w1.shape[-1]
    assert H % 2 == 0 and W % 2 == 0, "2x2 maxpool needs even H, W"
    assert W & (W - 1) == 0, "lane roll-tree BN reduction assumes power-of-two W"
    Hp, Wp = H // 2, W // 2

    x = jnp.transpose(x_nchw, (0, 2, 3, 1)).astype(jnp.float32)      # NHWC
    xh = jnp.pad(x, ((0, 0), (1, 1), (0, 0), (0, 0)))                # H halo only
    xh = xh.reshape(N, H + 2, W * Cin)                               # lane dim = W*Cin

    m1 = _banded_weights(w1.astype(jnp.float32), W)                  # (3, W*Cin, W*Cout)
    m2 = _banded_weights(w2.astype(jnp.float32), W)                  # (3, W*Cout, W*Cout)
    lane = lambda v: jnp.tile(v.astype(jnp.float32), W)              # (W*Cout,)
    bn = jnp.stack([lane(g1), lane(be1), lane(g2), lane(be2)])       # (4, W*Cout)
    sel = _pool_lane_selectors(W, Cout)                              # (2, W*Cout, Wp*Cout)

    out_shape = (jax.ShapeDtypeStruct((N * H, W * Cout), jnp.float32),
                 jax.ShapeDtypeStruct((N * Hp, Wp * Cout), jnp.float32))
    vmem = pl.BlockSpec(memory_space=pltpu.MemorySpace.VMEM)
    scratch = [pltpu.VMEM((N, H + 2, W * Cout), jnp.float32)]        # y1 + H halo

    def run(use_row_selectors):
        args = [xh, m1, m2, bn, sel]
        if use_row_selectors:
            args.append(_pool_row_selectors(N, H))
        kern = functools.partial(_encoder_kernel, H, W, Cin, Cout,
                                 use_row_selectors)
        y_flat, p_flat = pl.pallas_call(
            kern,
            out_shape=out_shape,
            in_specs=[vmem] * len(args),
            out_specs=(vmem, vmem),
            scratch_shapes=scratch,
        )(*args)
        return jax.block_until_ready((y_flat, p_flat))

    try:
        y_flat, p_flat = run(False)        # strided-slice row pooling (preferred)
    except Exception:                      # lowering fallback: 0/1 row selectors
        y_flat, p_flat = run(True)

    y = y_flat.reshape(N, H, W, Cout).transpose(0, 3, 1, 2)
    p = p_flat.reshape(N, Hp, Wp, Cout).transpose(0, 3, 1, 2)
    return y, p


# ----------------------------------------------------------------------------
# Pure-JAX reference mirroring the PyTorch module (training-mode BN)
# ----------------------------------------------------------------------------
def reference_forward(x_nchw, params):
    w1, b1, g1, be1, w2, b2, g2, be2 = params
    h = jnp.transpose(x_nchw, (0, 2, 3, 1)).astype(jnp.float32)

    def conv3x3(h, w, b):
        N, H, W, Ci = h.shape
        Co = w.shape[-1]
        hp = jnp.pad(h, ((0, 0), (1, 1), (1, 1), (0, 0)))
        out = jnp.zeros((N, H, W, Co), jnp.float32) + b
        for dy in range(3):
            for dx in range(3):
                patch = hp[:, dy:dy + H, dx:dx + W, :].reshape(-1, Ci)
                out = out + jnp.dot(patch, w[dy, dx],
                                    preferred_element_type=jnp.float32
                                    ).reshape(N, H, W, Co)
        return out

    def bn_relu(y, g, be):
        mu = jnp.mean(y, axis=(0, 1, 2), keepdims=True)
        var = jnp.mean((y - mu) ** 2, axis=(0, 1, 2), keepdims=True)
        return jnp.maximum((y - mu) * (g * lax.rsqrt(var + EPS)) + be, 0.0)

    y = bn_relu(conv3x3(h, w1, b1), g1, be1)
    y = bn_relu(conv3x3(y, w2, b2), g2, be2)
    N, H, W, C = y.shape
    p = y.reshape(N, H // 2, 2, W // 2, 2, C).max(axis=(2, 4))
    return jnp.transpose(y, (0, 3, 1, 2)), jnp.transpose(p, (0, 3, 1, 2))


if __name__ == "__main__":
    N, Cin, Cout, H, W = 2, 4, 8, 16, 16
    key = jax.random.PRNGKey(0)
    ks = jax.random.split(key, 9)
    x = jax.random.normal(ks[0], (N, Cin, H, W), jnp.float32)         # NCHW like PyTorch
    w1 = 0.2 * jax.random.normal(ks[1], (3, 3, Cin, Cout), jnp.float32)
    b1 = 0.1 * jax.random.normal(ks[2], (Cout,), jnp.float32)
    g1 = 1.0 + 0.1 * jax.random.normal(ks[3], (Cout,), jnp.float32)
    be1 = 0.1 * jax.random.normal(ks[4], (Cout,), jnp.float32)
    w2 = 0.2 * jax.random.normal(ks[5], (3, 3, Cout, Cout), jnp.float32)
    b2 = 0.1 * jax.random.normal(ks[6], (Cout,), jnp.float32)
    g2 = 1.0 + 0.1 * jax.random.normal(ks[7], (Cout,), jnp.float32)
    be2 = 0.1 * jax.random.normal(ks[8], (Cout,), jnp.float32)
    params = (w1, b1, g1, be1, w2, b2, g2, be2)

    y, p = jax.block_until_ready(encoder_block_forward(x, params))
    y_ref, p_ref = reference_forward(x, params)

    assert y.shape == (N, Cout, H, W) and p.shape == (N, Cout, H // 2, W // 2)
    # Tolerance covers default-precision (bf16-operand) MXU matmuls on either path.
    assert jnp.allclose(y, y_ref, atol=3e-2, rtol=3e-2)
    assert jnp.allclose(p, p_ref, atol=3e-2, rtol=3e-2)
    print("KERNEL_OK")
</pallas_src>

<mosaic_0001>
module attributes {stable_mosaic.version = 11 : i64} {
  func.func @_encoder_kernel(%arg0: memref<2x18x64xf32, #tpu.memory_space<vmem>>, %arg1: memref<3x64x128xf32, #tpu.memory_space<vmem>>, %arg2: memref<3x128x128xf32, #tpu.memory_space<vmem>>, %arg3: memref<4x128xf32, #tpu.memory_space<vmem>>, %arg4: memref<2x128x64xf32, #tpu.memory_space<vmem>>, %arg5: memref<32x128xf32, #tpu.memory_space<vmem>>, %arg6: memref<16x64xf32, #tpu.memory_space<vmem>>, %arg7: memref<2x18x128xf32, #tpu.memory_space<vmem>>) attributes {dimension_semantics = [], scalar_prefetch = 0 : i64, scratch_operands = 1 : i64, tpu.core_type = #tpu.core_type<tc>} {
    %c0 = arith.constant 0 : index
    %c0_0 = arith.constant 0 : index
    %c0_1 = arith.constant 0 : index
    %0 = vector.load %arg0[%c0, %c0_0, %c0_1] : memref<2x18x64xf32, #tpu.memory_space<vmem>>, vector<2x16x64xf32>
    %1 = vector.shape_cast %0 : vector<2x16x64xf32> to vector<32x64xf32>
    %c0_2 = arith.constant 0 : index
    %c0_3 = arith.constant 0 : index
    %c0_4 = arith.constant 0 : index
    %2 = vector.load %arg1[%c0_2, %c0_3, %c0_4] : memref<3x64x128xf32, #tpu.memory_space<vmem>>, vector<1x64x128xf32>
    %3 = vector.shape_cast %2 : vector<1x64x128xf32> to vector<64x128xf32>
    %cst = arith.constant dense<0.000000e+00> : vector<32x128xf32>
    %4 = tpu.matmul %1, %3, %cst {dimension_numbers = #tpu.dot_dimension_numbers<[1], [0], [0], [1], [0, 0, 1, 1], [], []>} : vector<32x64xf32>, vector<64x128xf32>, vector<32x128xf32> -> vector<32x128xf32>
    %c0_5 = arith.constant 0 : index
    %c1 = arith.constant 1 : index
    %c0_6 = arith.constant 0 : index
    %5 = vector.load %arg0[%c0_5, %c1, %c0_6] : memref<2x18x64xf32, #tpu.memory_space<vmem>>, vector<2x16x64xf32>
    %6 = vector.shape_cast %5 : vector<2x16x64xf32> to vector<32x64xf32>
    %c1_7 = arith.constant 1 : index
    %c0_8 = arith.constant 0 : index
    %c0_9 = arith.constant 0 : index
    %7 = vector.load %arg1[%c1_7, %c0_8, %c0_9] : memref<3x64x128xf32, #tpu.memory_space<vmem>>, vector<1x64x128xf32>
    %8 = vector.shape_cast %7 : vector<1x64x128xf32> to vector<64x128xf32>
    %cst_10 = arith.constant dense<0.000000e+00> : vector<32x128xf32>
    %9 = tpu.matmul %6, %8, %cst_10 {dimension_numbers = #tpu.dot_dimension_numbers<[1], [0], [0], [1], [0, 0, 1, 1], [], []>} : vector<32x64xf32>, vector<64x128xf32>, vector<32x128xf32> -> vector<32x128xf32>
    %10 = arith.addf %4, %9 : vector<32x128xf32>
    %c0_11 = arith.constant 0 : index
    %c2 = arith.constant 2 : index
    %c0_12 = arith.constant 0 : index
    %11 = vector.load %arg0[%c0_11, %c2, %c0_12] : memref<2x18x64xf32, #tpu.memory_space<vmem>>, vector<2x16x64xf32>
    %12 = vector.shape_cast %11 : vector<2x16x64xf32> to vector<32x64xf32>
    %c2_13 = arith.constant 2 : index
    %c0_14 = arith.constant 0 : index
    %c0_15 = arith.constant 0 : index
    %13 = vector.load %arg1[%c2_13, %c0_14, %c0_15] : memref<3x64x128xf32, #tpu.memory_space<vmem>>, vector<1x64x128xf32>
    %14 = vector.shape_cast %13 : vector<1x64x128xf32> to vector<64x128xf32>
    %cst_16 = arith.constant dense<0.000000e+00> : vector<32x128xf32>
    %15 = tpu.matmul %12, %14, %cst_16 {dimension_numbers = #tpu.dot_dimension_numbers<[1], [0], [0], [1], [0, 0, 1, 1], [], []>} : vector<32x64xf32>, vector<64x128xf32>, vector<32x128xf32> -> vector<32x128xf32>
    %16 = arith.addf %10, %15 : vector<32x128xf32>
    %cst_17 = arith.constant dense<0.000000e+00> : vector<128xf32>
    %17 = vector.multi_reduction <add>, %16, %cst_17 [0] : vector<32x128xf32> to vector<128xf32>
    %18 = vector.shape_cast %17 : vector<128xf32> to vector<1x128xf32>
    %19 = arith.mulf %16, %16 : vector<32x128xf32>
    %cst_18 = arith.constant dense<0.000000e+00> : vector<128xf32>
    %20 = vector.multi_reduction <add>, %19, %cst_18 [0] : vector<32x128xf32> to vector<128xf32>
    %21 = vector.shape_cast %20 : vector<128xf32> to vector<1x128xf32>
    %22 = tpu.concatenate %18, %21 in 0 : vector<1x128xf32>, vector<1x128xf32> -> vector<2x128xf32>
    %c8_i32 = arith.constant 8 : i32
    %23 = tpu.dynamic_rotate %22 by %c8_i32 dim 1 : vector<2x128xf32>, i32 -> vector<2x128xf32>
    %24 = arith.addf %22, %23 : vector<2x128xf32>
    %c16_i32 = arith.constant 16 : i32
    %25 = tpu.dynamic_rotate %24 by %c16_i32 dim 1 : vector<2x128xf32>, i32 -> vector<2x128xf32>
    %26 = arith.addf %24, %25 : vector<2x128xf32>
    %c32_i32 = arith.constant 32 : i32
    %27 = tpu.dynamic_rotate %26 by %c32_i32 dim 1 : vector<2x128xf32>, i32 -> vector<2x128xf32>
    %28 = arith.addf %26, %27 : vector<2x128xf32>
    %c64_i32 = arith.constant 64 : i32
    %29 = tpu.dynamic_rotate %28 by %c64_i32 dim 1 : vector<2x128xf32>, i32 -> vector<2x128xf32>
    %30 = arith.addf %28, %29 : vector<2x128xf32>
    %31 = vector.extract_strided_slice %30 {offsets = [0, 0], sizes = [1, 128], strides = [1, 1]} : vector<2x128xf32> to vector<1x128xf32>
    %cst_19 = arith.constant 0.001953125 : f32
    %32 = vector.broadcast %cst_19 : f32 to vector<1x128xf32>
    %33 = arith.mulf %31, %32 : vector<1x128xf32>
    %34 = vector.extract_strided_slice %30 {offsets = [1, 0], sizes = [1, 128], strides = [1, 1]} : vector<2x128xf32> to vector<1x128xf32>
    %cst_20 = arith.constant 0.001953125 : f32
    %35 = vector.broadcast %cst_20 : f32 to vector<1x128xf32>
    %36 = arith.mulf %34, %35 : vector<1x128xf32>
    %37 = arith.mulf %33, %33 : vector<1x128xf32>
    %38 = arith.subf %36, %37 : vector<1x128xf32>
    %c0_21 = arith.constant 0 : index
    %c0_22 = arith.constant 0 : index
    %39 = vector.load %arg3[%c0_21, %c0_22] : memref<4x128xf32, #tpu.memory_space<vmem>>, vector<1x128xf32>
    %cst_23 = arith.constant 9.99999974E-6 : f32
    %40 = vector.broadcast %cst_23 : f32 to vector<1x128xf32>
    %41 = arith.addf %38, %40 : vector<1x128xf32>
    %42 = math.rsqrt %41 : vector<1x128xf32>
    %43 = arith.mulf %39, %42 : vector<1x128xf32>
    %44 = vector.broadcast %33 : vector<1x128xf32> to vector<32x128xf32>
    %45 = arith.subf %16, %44 : vector<32x128xf32>
    %46 = vector.broadcast %43 : vector<1x128xf32> to vector<32x128xf32>
    %47 = arith.mulf %45, %46 : vector<32x128xf32>
    %c1_24 = arith.constant 1 : index
    %c0_25 = arith.constant 0 : index
    %48 = vector.load %arg3[%c1_24, %c0_25] : memref<4x128xf32, #tpu.memory_space<vmem>>, vector<1x128xf32>
    %49 = vector.broadcast %48 : vector<1x128xf32> to vector<32x128xf32>
    %50 = arith.addf %47, %49 : vector<32x128xf32>
    %cst_26 = arith.constant 0.000000e+00 : f32
    %51 = vector.broadcast %cst_26 : f32 to vector<32x128xf32>
    %52 = arith.maximumf %50, %51 : vector<32x128xf32>
    %cst_27 = arith.constant 0.000000e+00 : f32
    %53 = vector.broadcast %cst_27 : f32 to vector<2x1x128xf32>
    %c0_28 = arith.constant 0 : index
    %c0_29 = arith.constant 0 : index
    %c0_30 = arith.constant 0 : index
    %54 = vector.load %arg7[%c0_28, %c0_29, %c0_30] : memref<2x18x128xf32, #tpu.memory_space<vmem>>, vector<2x1x128xf32>
    tpu.vector_store %arg7[%c0_28, %c0_29, %c0_30], %53 {strides = array<i32>} : memref<2x18x128xf32, #tpu.memory_space<vmem>>, vector<2x1x128xf32>,
    %cst_31 = arith.constant 0.000000e+00 : f32
    %55 = vector.broadcast %cst_31 : f32 to vector<2x1x128xf32>
    %c0_32 = arith.constant 0 : index
    %c17 = arith.constant 17 : index
    %c0_33 = arith.constant 0 : index
    %56 = vector.load %arg7[%c0_32, %c17, %c0_33] : memref<2x18x128xf32, #tpu.memory_space<vmem>>, vector<2x1x128xf32>
    tpu.vector_store %arg7[%c0_32, %c17, %c0_33], %55 {strides = array<i32>} : memref<2x18x128xf32, #tpu.memory_space<vmem>>, vector<2x1x128xf32>,
    %57 = vector.shape_cast %52 : vector<32x128xf32> to vector<2x16x128xf32>
    %c0_34 = arith.constant 0 : index
    %c1_35 = arith.constant 1 : index
    %c0_36 = arith.constant 0 : index
    %58 = vector.load %arg7[%c0_34, %c1_35, %c0_36] : memref<2x18x128xf32, #tpu.memory_space<vmem>>, vector<2x16x128xf32>
    tpu.vector_store %arg7[%c0_34, %c1_35, %c0_36], %57 {strides = array<i32>} : memref<2x18x128xf32, #tpu.memory_space<vmem>>, vector<2x16x128xf32>,
    %c0_37 = arith.constant 0 : index
    %c0_38 = arith.constant 0 : index
    %c0_39 = arith.constant 0 : index
    %59 = vector.load %arg7[%c0_37, %c0_38, %c0_39] : memref<2x18x128xf32, #tpu.memory_space<vmem>>, vector<2x16x128xf32>
    %60 = vector.shape_cast %59 : vector<2x16x128xf32> to vector<32x128xf32>
    %c0_40 = arith.constant 0 : index
    %c0_41 = arith.constant 0 : index
    %c0_42 = arith.constant 0 : index
    %61 = vector.load %arg2[%c0_40, %c0_41, %c0_42] : memref<3x128x128xf32, #tpu.memory_space<vmem>>, vector<1x128x128xf32>
    %62 = vector.shape_cast %61 : vector<1x128x128xf32> to vector<128x128xf32>
    %cst_43 = arith.constant dense<0.000000e+00> : vector<32x128xf32>
    %63 = tpu.matmul %60, %62, %cst_43 {dimension_numbers = #tpu.dot_dimension_numbers<[1], [0], [0], [1], [0, 0, 1, 1], [], []>} : vector<32x128xf32>, vector<128x128xf32>, vector<32x128xf32> -> vector<32x128xf32>
    %c0_44 = arith.constant 0 : index
    %c1_45 = arith.constant 1 : index
    %c0_46 = arith.constant 0 : index
    %64 = vector.load %arg7[%c0_44, %c1_45, %c0_46] : memref<2x18x128xf32, #tpu.memory_space<vmem>>, vector<2x16x128xf32>
    %65 = vector.shape_cast %64 : vector<2x16x128xf32> to vector<32x128xf32>
    %c1_47 = arith.constant 1 : index
    %c0_48 = arith.constant 0 : index
    %c0_49 = arith.constant 0 : index
    %66 = vector.load %arg2[%c1_47, %c0_48, %c0_49] : memref<3x128x128xf32, #tpu.memory_space<vmem>>, vector<1x128x128xf32>
    %67 = vector.shape_cast %66 : vector<1x128x128xf32> to vector<128x128xf32>
    %cst_50 = arith.constant dense<0.000000e+00> : vector<32x128xf32>
    %68 = tpu.matmul %65, %67, %cst_50 {dimension_numbers = #tpu.dot_dimension_numbers<[1], [0], [0], [1], [0, 0, 1, 1], [], []>} : vector<32x128xf32>, vector<128x128xf32>, vector<32x128xf32> -> vector<32x128xf32>
    %69 = arith.addf %63, %68 : vector<32x128xf32>
    %c0_51 = arith.constant 0 : index
    %c2_52 = arith.constant 2 : index
    %c0_53 = arith.constant 0 : index
    %70 = vector.load %arg7[%c0_51, %c2_52, %c0_53] : memref<2x18x128xf32, #tpu.memory_space<vmem>>, vector<2x16x128xf32>
    %71 = vector.shape_cast %70 : vector<2x16x128xf32> to vector<32x128xf32>
    %c2_54 = arith.constant 2 : index
    %c0_55 = arith.constant 0 : index
    %c0_56 = arith.constant 0 : index
    %72 = vector.load %arg2[%c2_54, %c0_55, %c0_56] : memref<3x128x128xf32, #tpu.memory_space<vmem>>, vector<1x128x128xf32>
    %73 = vector.shape_cast %72 : vector<1x128x128xf32> to vector<128x128xf32>
    %cst_57 = arith.constant dense<0.000000e+00> : vector<32x128xf32>
    %74 = tpu.matmul %71, %73, %cst_57 {dimension_numbers = #tpu.dot_dimension_numbers<[1], [0], [0], [1], [0, 0, 1, 1], [], []>} : vector<32x128xf32>, vector<128x128xf32>, vector<32x128xf32> -> vector<32x128xf32>
    %75 = arith.addf %69, %74 : vector<32x128xf32>
    %cst_58 = arith.constant dense<0.000000e+00> : vector<128xf32>
    %76 = vector.multi_reduction <add>, %75, %cst_58 [0] : vector<32x128xf32> to vector<128xf32>
    %77 = vector.shape_cast %76 : vector<128xf32> to vector<1x128xf32>
    %78 = arith.mulf %75, %75 : vector<32x128xf32>
    %cst_59 = arith.constant dense<0.000000e+00> : vector<128xf32>
    %79 = vector.multi_reduction <add>, %78, %cst_59 [0] : vector<32x128xf32> to vector<128xf32>
    %80 = vector.shape_cast %79 : vector<128xf32> to vector<1x128xf32>
    %81 = tpu.concatenate %77, %80 in 0 : vector<1x128xf32>, vector<1x128xf32> -> vector<2x128xf32>
    %c8_i32_60 = arith.constant 8 : i32
    %82 = tpu.dynamic_rotate %81 by %c8_i32_60 dim 1 : vector<2x128xf32>, i32 -> vector<2x128xf32>
    %83 = arith.addf %81, %82 : vector<2x128xf32>
    %c16_i32_61 = arith.constant 16 : i32
    %84 = tpu.dynamic_rotate %83 by %c16_i32_61 dim 1 : vector<2x128xf32>, i32 -> vector<2x128xf32>
    %85 = arith.addf %83, %84 : vector<2x128xf32>
    %c32_i32_62 = arith.constant 32 : i32
    %86 = tpu.dynamic_rotate %85 by %c32_i32_62 dim 1 : vector<2x128xf32>, i32 -> vector<2x128xf32>
    %87 = arith.addf %85, %86 : vector<2x128xf32>
    %c64_i32_63 = arith.constant 64 : i32
    %88 = tpu.dynamic_rotate %87 by %c64_i32_63 dim 1 : vector<2x128xf32>, i32 -> vector<2x128xf32>
    %89 = arith.addf %87, %88 : vector<2x128xf32>
    %90 = vector.extract_strided_slice %89 {offsets = [0, 0], sizes = [1, 128], strides = [1, 1]} : vector<2x128xf32> to vector<1x128xf32>
    %cst_64 = arith.constant 0.001953125 : f32
    %91 = vector.broadcast %cst_64 : f32 to vector<1x128xf32>
    %92 = arith.mulf %90, %91 : vector<1x128xf32>
    %93 = vector.extract_strided_slice %89 {offsets = [1, 0], sizes = [1, 128], strides = [1, 1]} : vector<2x128xf32> to vector<1x128xf32>
    %cst_65 = arith.constant 0.001953125 : f32
    %94 = vector.broadcast %cst_65 : f32 to vector<1x128xf32>
    %95 = arith.mulf %93, %94 : vector<1x128xf32>
    %96 = arith.mulf %92, %92 : vector<1x128xf32>
    %97 = arith.subf %95, %96 : vector<1x128xf32>
    %c2_66 = arith.constant 2 : index
    %c0_67 = arith.constant 0 : index
    %98 = vector.load %arg3[%c2_66, %c0_67] : memref<4x128xf32, #tpu.memory_space<vmem>>, vector<1x128xf32>
    %cst_68 = arith.constant 9.99999974E-6 : f32
    %99 = vector.broadcast %cst_68 : f32 to vector<1x128xf32>
    %100 = arith.addf %97, %99 : vector<1x128xf32>
    %101 = math.rsqrt %100 : vector<1x128xf32>
    %102 = arith.mulf %98, %101 : vector<1x128xf32>
    %103 = vector.broadcast %92 : vector<1x128xf32> to vector<32x128xf32>
    %104 = arith.subf %75, %103 : vector<32x128xf32>
    %105 = vector.broadcast %102 : vector<1x128xf32> to vector<32x128xf32>
    %106 = arith.mulf %104, %105 : vector<32x128xf32>
    %c3 = arith.constant 3 : index
    %c0_69 = arith.constant 0 : index
    %107 = vector.load %arg3[%c3, %c0_69] : memref<4x128xf32, #tpu.memory_space<vmem>>, vector<1x128xf32>
    %108 = vector.broadcast %107 : vector<1x128xf32> to vector<32x128xf32>
    %109 = arith.addf %106, %108 : vector<32x128xf32>
    %cst_70 = arith.constant 0.000000e+00 : f32
    %110 = vector.broadcast %cst_70 : f32 to vector<32x128xf32>
    %111 = arith.maximumf %109, %110 : vector<32x128xf32>
    %c0_71 = arith.constant 0 : index
    %c0_72 = arith.constant 0 : index
    %112 = vector.load %arg5[%c0_71, %c0_72] : memref<32x128xf32, #tpu.memory_space<vmem>>, vector<32x128xf32>
    tpu.vector_store %arg5[%c0_71, %c0_72], %111 {strides = array<i32>} : memref<32x128xf32, #tpu.memory_space<vmem>>, vector<32x128xf32>,
    %c0_73 = arith.constant 0 : index
    %c0_74 = arith.constant 0 : index
    %113 = tpu.strided_load %arg5[%c0_73, %c0_74] {strides = array<i32: 2, 1>} : memref<32x128xf32, #tpu.memory_space<vmem>>, vector<16x128xf32>
    %c1_75 = arith.constant 1 : index
    %c0_76 = arith.constant 0 : index
    %114 = tpu.strided_load %arg5[%c1_75, %c0_76] {strides = array<i32: 2, 1>} : memref<32x128xf32, #tpu.memory_space<vmem>>, vector<16x128xf32>
    %115 = arith.maximumf %113, %114 : vector<16x128xf32>
    %c0_77 = arith.constant 0 : index
    %c0_78 = arith.constant 0 : index
    %c0_79 = arith.constant 0 : index
    %116 = vector.load %arg4[%c0_77, %c0_78, %c0_79] : memref<2x128x64xf32, #tpu.memory_space<vmem>>, vector<1x128x64xf32>
    %117 = vector.shape_cast %116 : vector<1x128x64xf32> to vector<128x64xf32>
    %cst_80 = arith.constant dense<0.000000e+00> : vector<16x64xf32>
    %118 = tpu.matmul %115, %117, %cst_80 {dimension_numbers = #tpu.dot_dimension_numbers<[1], [0], [0], [1], [0, 0, 1, 1], [], []>} : vector<16x128xf32>, vector<128x64xf32>, vector<16x64xf32> -> vector<16x64xf32>
    %c1_81 = arith.constant 1 : index
    %c0_82 = arith.constant 0 : index
    %c0_83 = arith.constant 0 : index
    %119 = vector.load %arg4[%c1_81, %c0_82, %c0_83] : memref<2x128x64xf32, #tpu.memory_space<vmem>>, vector<1x128x64xf32>
    %120 = vector.shape_cast %119 : vector<1x128x64xf32> to vector<128x64xf32>
    %cst_84 = arith.constant dense<0.000000e+00> : vector<16x64xf32>
    %121 = tpu.matmul %115, %120, %cst_84 {dimension_numbers = #tpu.dot_dimension_numbers<[1], [0], [0], [1], [0, 0, 1, 1], [], []>} : vector<16x128xf32>, vector<128x64xf32>, vector<16x64xf32> -> vector<16x64xf32>
    %122 = arith.maximumf %118, %121 : vector<16x64xf32>
    %c0_85 = arith.constant 0 : index
    %c0_86 = arith.constant 0 : index
    %123 = vector.load %arg6[%c0_85, %c0_86] : memref<16x64xf32, #tpu.memory_space<vmem>>, vector<16x64xf32>
    tpu.vector_store %arg6[%c0_85, %c0_86], %122 {strides = array<i32>} : memref<16x64xf32, #tpu.memory_space<vmem>>, vector<16x64xf32>,
    return
  }
}

module attributes {stable_mosaic.version = 11 : i64} {
  func.func @_encoder_kernel(%arg0: memref<2x18x64xf32, #tpu.memory_space<vmem>>, %arg1: memref<3x64x128xf32, #tpu.memory_space<vmem>>, %arg2: memref<3x128x128xf32, #tpu.memory_space<vmem>>, %arg3: memref<4x128xf32, #tpu.memory_space<vmem>>, %arg4: memref<2x128x64xf32, #tpu.memory_space<vmem>>, %arg5: memref<2x16x32xf32, #tpu.memory_space<vmem>>, %arg6: memref<32x128xf32, #tpu.memory_space<vmem>>, %arg7: memref<16x64xf32, #tpu.memory_space<vmem>>, %arg8: memref<2x18x128xf32, #tpu.memory_space<vmem>>) attributes {dimension_semantics = [], scalar_prefetch = 0 : i64, scratch_operands = 1 : i64, tpu.core_type = #tpu.core_type<tc>} {
    %c0 = arith.constant 0 : index
    %c0_0 = arith.constant 0 : index
    %c0_1 = arith.constant 0 : index
    %0 = vector.load %arg0[%c0, %c0_0, %c0_1] : memref<2x18x64xf32, #tpu.memory_space<vmem>>, vector<2x16x64xf32>
    %1 = vector.shape_cast %0 : vector<2x16x64xf32> to vector<32x64xf32>
    %c0_2 = arith.constant 0 : index
    %c0_3 = arith.constant 0 : index
    %c0_4 = arith.constant 0 : index
    %2 = vector.load %arg1[%c0_2, %c0_3, %c0_4] : memref<3x64x128xf32, #tpu.memory_space<vmem>>, vector<1x64x128xf32>
    %3 = vector.shape_cast %2 : vector<1x64x128xf32> to vector<64x128xf32>
    %cst = arith.constant dense<0.000000e+00> : vector<32x128xf32>
    %4 = tpu.matmul %1, %3, %cst {dimension_numbers = #tpu.dot_dimension_numbers<[1], [0], [0], [1], [0, 0, 1, 1], [], []>} : vector<32x64xf32>, vector<64x128xf32>, vector<32x128xf32> -> vector<32x128xf32>
    %c0_5 = arith.constant 0 : index
    %c1 = arith.constant 1 : index
    %c0_6 = arith.constant 0 : index
    %5 = vector.load %arg0[%c0_5, %c1, %c0_6] : memref<2x18x64xf32, #tpu.memory_space<vmem>>, vector<2x16x64xf32>
    %6 = vector.shape_cast %5 : vector<2x16x64xf32> to vector<32x64xf32>
    %c1_7 = arith.constant 1 : index
    %c0_8 = arith.constant 0 : index
    %c0_9 = arith.constant 0 : index
    %7 = vector.load %arg1[%c1_7, %c0_8, %c0_9] : memref<3x64x128xf32, #tpu.memory_space<vmem>>, vector<1x64x128xf32>
    %8 = vector.shape_cast %7 : vector<1x64x128xf32> to vector<64x128xf32>
    %cst_10 = arith.constant dense<0.000000e+00> : vector<32x128xf32>
    %9 = tpu.matmul %6, %8, %cst_10 {dimension_numbers = #tpu.dot_dimension_numbers<[1], [0], [0], [1], [0, 0, 1, 1], [], []>} : vector<32x64xf32>, vector<64x128xf32>, vector<32x128xf32> -> vector<32x128xf32>
    %10 = arith.addf %4, %9 : vector<32x128xf32>
    %c0_11 = arith.constant 0 : index
    %c2 = arith.constant 2 : index
    %c0_12 = arith.constant 0 : index
    %11 = vector.load %arg0[%c0_11, %c2, %c0_12] : memref<2x18x64xf32, #tpu.memory_space<vmem>>, vector<2x16x64xf32>
    %12 = vector.shape_cast %11 : vector<2x16x64xf32> to vector<32x64xf32>
    %c2_13 = arith.constant 2 : index
    %c0_14 = arith.constant 0 : index
    %c0_15 = arith.constant 0 : index
    %13 = vector.load %arg1[%c2_13, %c0_14, %c0_15] : memref<3x64x128xf32, #tpu.memory_space<vmem>>, vector<1x64x128xf32>
    %14 = vector.shape_cast %13 : vector<1x64x128xf32> to vector<64x128xf32>
    %cst_16 = arith.constant dense<0.000000e+00> : vector<32x128xf32>
    %15 = tpu.matmul %12, %14, %cst_16 {dimension_numbers = #tpu.dot_dimension_numbers<[1], [0], [0], [1], [0, 0, 1, 1], [], []>} : vector<32x64xf32>, vector<64x128xf32>, vector<32x128xf32> -> vector<32x128xf32>
    %16 = arith.addf %10, %15 : vector<32x128xf32>
    %cst_17 = arith.constant dense<0.000000e+00> : vector<128xf32>
    %17 = vector.multi_reduction <add>, %16, %cst_17 [0] : vector<32x128xf32> to vector<128xf32>
    %18 = vector.shape_cast %17 : vector<128xf32> to vector<1x128xf32>
    %19 = arith.mulf %16, %16 : vector<32x128xf32>
    %cst_18 = arith.constant dense<0.000000e+00> : vector<128xf32>
    %20 = vector.multi_reduction <add>, %19, %cst_18 [0] : vector<32x128xf32> to vector<128xf32>
    %21 = vector.shape_cast %20 : vector<128xf32> to vector<1x128xf32>
    %22 = tpu.concatenate %18, %21 in 0 : vector<1x128xf32>, vector<1x128xf32> -> vector<2x128xf32>
    %c8_i32 = arith.constant 8 : i32
    %23 = tpu.dynamic_rotate %22 by %c8_i32 dim 1 : vector<2x128xf32>, i32 -> vector<2x128xf32>
    %24 = arith.addf %22, %23 : vector<2x128xf32>
    %c16_i32 = arith.constant 16 : i32
    %25 = tpu.dynamic_rotate %24 by %c16_i32 dim 1 : vector<2x128xf32>, i32 -> vector<2x128xf32>
    %26 = arith.addf %24, %25 : vector<2x128xf32>
    %c32_i32 = arith.constant 32 : i32
    %27 = tpu.dynamic_rotate %26 by %c32_i32 dim 1 : vector<2x128xf32>, i32 -> vector<2x128xf32>
    %28 = arith.addf %26, %27 : vector<2x128xf32>
    %c64_i32 = arith.constant 64 : i32
    %29 = tpu.dynamic_rotate %28 by %c64_i32 dim 1 : vector<2x128xf32>, i32 -> vector<2x128xf32>
    %30 = arith.addf %28, %29 : vector<2x128xf32>
    %31 = vector.extract_strided_slice %30 {offsets = [0, 0], sizes = [1, 128], strides = [1, 1]} : vector<2x128xf32> to vector<1x128xf32>
    %cst_19 = arith.constant 0.001953125 : f32
    %32 = vector.broadcast %cst_19 : f32 to vector<1x128xf32>
    %33 = arith.mulf %31, %32 : vector<1x128xf32>
    %34 = vector.extract_strided_slice %30 {offsets = [1, 0], sizes = [1, 128], strides = [1, 1]} : vector<2x128xf32> to vector<1x128xf32>
    %cst_20 = arith.constant 0.001953125 : f32
    %35 = vector.broadcast %cst_20 : f32 to vector<1x128xf32>
    %36 = arith.mulf %34, %35 : vector<1x128xf32>
    %37 = arith.mulf %33, %33 : vector<1x128xf32>
    %38 = arith.subf %36, %37 : vector<1x128xf32>
    %c0_21 = arith.constant 0 : index
    %c0_22 = arith.constant 0 : index
    %39 = vector.load %arg3[%c0_21, %c0_22] : memref<4x128xf32, #tpu.memory_space<vmem>>, vector<1x128xf32>
    %cst_23 = arith.constant 9.99999974E-6 : f32
    %40 = vector.broadcast %cst_23 : f32 to vector<1x128xf32>
    %41 = arith.addf %38, %40 : vector<1x128xf32>
    %42 = math.rsqrt %41 : vector<1x128xf32>
    %43 = arith.mulf %39, %42 : vector<1x128xf32>
    %44 = vector.broadcast %33 : vector<1x128xf32> to vector<32x128xf32>
    %45 = arith.subf %16, %44 : vector<32x128xf32>
    %46 = vector.broadcast %43 : vector<1x128xf32> to vector<32x128xf32>
    %47 = arith.mulf %45, %46 : vector<32x128xf32>
    %c1_24 = arith.constant 1 : index
    %c0_25 = arith.constant 0 : index
    %48 = vector.load %arg3[%c1_24, %c0_25] : memref<4x128xf32, #tpu.memory_space<vmem>>, vector<1x128xf32>
    %49 = vector.broadcast %48 : vector<1x128xf32> to vector<32x128xf32>
    %50 = arith.addf %47, %49 : vector<32x128xf32>
    %cst_26 = arith.constant 0.000000e+00 : f32
    %51 = vector.broadcast %cst_26 : f32 to vector<32x128xf32>
    %52 = arith.maximumf %50, %51 : vector<32x128xf32>
    %cst_27 = arith.constant 0.000000e+00 : f32
    %53 = vector.broadcast %cst_27 : f32 to vector<2x1x128xf32>
    %c0_28 = arith.constant 0 : index
    %c0_29 = arith.constant 0 : index
    %c0_30 = arith.constant 0 : index
    %54 = vector.load %arg8[%c0_28, %c0_29, %c0_30] : memref<2x18x128xf32, #tpu.memory_space<vmem>>, vector<2x1x128xf32>
    tpu.vector_store %arg8[%c0_28, %c0_29, %c0_30], %53 {strides = array<i32>} : memref<2x18x128xf32, #tpu.memory_space<vmem>>, vector<2x1x128xf32>,
    %cst_31 = arith.constant 0.000000e+00 : f32
    %55 = vector.broadcast %cst_31 : f32 to vector<2x1x128xf32>
    %c0_32 = arith.constant 0 : index
    %c17 = arith.constant 17 : index
    %c0_33 = arith.constant 0 : index
    %56 = vector.load %arg8[%c0_32, %c17, %c0_33] : memref<2x18x128xf32, #tpu.memory_space<vmem>>, vector<2x1x128xf32>
    tpu.vector_store %arg8[%c0_32, %c17, %c0_33], %55 {strides = array<i32>} : memref<2x18x128xf32, #tpu.memory_space<vmem>>, vector<2x1x128xf32>,
    %57 = vector.shape_cast %52 : vector<32x128xf32> to vector<2x16x128xf32>
    %c0_34 = arith.constant 0 : index
    %c1_35 = arith.constant 1 : index
    %c0_36 = arith.constant 0 : index
    %58 = vector.load %arg8[%c0_34, %c1_35, %c0_36] : memref<2x18x128xf32, #tpu.memory_space<vmem>>, vector<2x16x128xf32>
    tpu.vector_store %arg8[%c0_34, %c1_35, %c0_36], %57 {strides = array<i32>} : memref<2x18x128xf32, #tpu.memory_space<vmem>>, vector<2x16x128xf32>,
    %c0_37 = arith.constant 0 : index
    %c0_38 = arith.constant 0 : index
    %c0_39 = arith.constant 0 : index
    %59 = vector.load %arg8[%c0_37, %c0_38, %c0_39] : memref<2x18x128xf32, #tpu.memory_space<vmem>>, vector<2x16x128xf32>
    %60 = vector.shape_cast %59 : vector<2x16x128xf32> to vector<32x128xf32>
    %c0_40 = arith.constant 0 : index
    %c0_41 = arith.constant 0 : index
    %c0_42 = arith.constant 0 : index
    %61 = vector.load %arg2[%c0_40, %c0_41, %c0_42] : memref<3x128x128xf32, #tpu.memory_space<vmem>>, vector<1x128x128xf32>
    %62 = vector.shape_cast %61 : vector<1x128x128xf32> to vector<128x128xf32>
    %cst_43 = arith.constant dense<0.000000e+00> : vector<32x128xf32>
    %63 = tpu.matmul %60, %62, %cst_43 {dimension_numbers = #tpu.dot_dimension_numbers<[1], [0], [0], [1], [0, 0, 1, 1], [], []>} : vector<32x128xf32>, vector<128x128xf32>, vector<32x128xf32> -> vector<32x128xf32>
    %c0_44 = arith.constant 0 : index
    %c1_45 = arith.constant 1 : index
    %c0_46 = arith.constant 0 : index
    %64 = vector.load %arg8[%c0_44, %c1_45, %c0_46] : memref<2x18x128xf32, #tpu.memory_space<vmem>>, vector<2x16x128xf32>
    %65 = vector.shape_cast %64 : vector<2x16x128xf32> to vector<32x128xf32>
    %c1_47 = arith.constant 1 : index
    %c0_48 = arith.constant 0 : index
    %c0_49 = arith.constant 0 : index
    %66 = vector.load %arg2[%c1_47, %c0_48, %c0_49] : memref<3x128x128xf32, #tpu.memory_space<vmem>>, vector<1x128x128xf32>
    %67 = vector.shape_cast %66 : vector<1x128x128xf32> to vector<128x128xf32>
    %cst_50 = arith.constant dense<0.000000e+00> : vector<32x128xf32>
    %68 = tpu.matmul %65, %67, %cst_50 {dimension_numbers = #tpu.dot_dimension_numbers<[1], [0], [0], [1], [0, 0, 1, 1], [], []>} : vector<32x128xf32>, vector<128x128xf32>, vector<32x128xf32> -> vector<32x128xf32>
    %69 = arith.addf %63, %68 : vector<32x128xf32>
    %c0_51 = arith.constant 0 : index
    %c2_52 = arith.constant 2 : index
    %c0_53 = arith.constant 0 : index
    %70 = vector.load %arg8[%c0_51, %c2_52, %c0_53] : memref<2x18x128xf32, #tpu.memory_space<vmem>>, vector<2x16x128xf32>
    %71 = vector.shape_cast %70 : vector<2x16x128xf32> to vector<32x128xf32>
    %c2_54 = arith.constant 2 : index
    %c0_55 = arith.constant 0 : index
    %c0_56 = arith.constant 0 : index
    %72 = vector.load %arg2[%c2_54, %c0_55, %c0_56] : memref<3x128x128xf32, #tpu.memory_space<vmem>>, vector<1x128x128xf32>
    %73 = vector.shape_cast %72 : vector<1x128x128xf32> to vector<128x128xf32>
    %cst_57 = arith.constant dense<0.000000e+00> : vector<32x128xf32>
    %74 = tpu.matmul %71, %73, %cst_57 {dimension_numbers = #tpu.dot_dimension_numbers<[1], [0], [0], [1], [0, 0, 1, 1], [], []>} : vector<32x128xf32>, vector<128x128xf32>, vector<32x128xf32> -> vector<32x128xf32>
    %75 = arith.addf %69, %74 : vector<32x128xf32>
    %cst_58 = arith.constant dense<0.000000e+00> : vector<128xf32>
    %76 = vector.multi_reduction <add>, %75, %cst_58 [0] : vector<32x128xf32> to vector<128xf32>
    %77 = vector.shape_cast %76 : vector<128xf32> to vector<1x128xf32>
    %78 = arith.mulf %75, %75 : vector<32x128xf32>
    %cst_59 = arith.constant dense<0.000000e+00> : vector<128xf32>
    %79 = vector.multi_reduction <add>, %78, %cst_59 [0] : vector<32x128xf32> to vector<128xf32>
    %80 = vector.shape_cast %79 : vector<128xf32> to vector<1x128xf32>
    %81 = tpu.concatenate %77, %80 in 0 : vector<1x128xf32>, vector<1x128xf32> -> vector<2x128xf32>
    %c8_i32_60 = arith.constant 8 : i32
    %82 = tpu.dynamic_rotate %81 by %c8_i32_60 dim 1 : vector<2x128xf32>, i32 -> vector<2x128xf32>
    %83 = arith.addf %81, %82 : vector<2x128xf32>
    %c16_i32_61 = arith.constant 16 : i32
    %84 = tpu.dynamic_rotate %83 by %c16_i32_61 dim 1 : vector<2x128xf32>, i32 -> vector<2x128xf32>
    %85 = arith.addf %83, %84 : vector<2x128xf32>
    %c32_i32_62 = arith.constant 32 : i32
    %86 = tpu.dynamic_rotate %85 by %c32_i32_62 dim 1 : vector<2x128xf32>, i32 -> vector<2x128xf32>
    %87 = arith.addf %85, %86 : vector<2x128xf32>
    %c64_i32_63 = arith.constant 64 : i32
    %88 = tpu.dynamic_rotate %87 by %c64_i32_63 dim 1 : vector<2x128xf32>, i32 -> vector<2x128xf32>
    %89 = arith.addf %87, %88 : vector<2x128xf32>
    %90 = vector.extract_strided_slice %89 {offsets = [0, 0], sizes = [1, 128], strides = [1, 1]} : vector<2x128xf32> to vector<1x128xf32>
    %cst_64 = arith.constant 0.001953125 : f32
    %91 = vector.broadcast %cst_64 : f32 to vector<1x128xf32>
    %92 = arith.mulf %90, %91 : vector<1x128xf32>
    %93 = vector.extract_strided_slice %89 {offsets = [1, 0], sizes = [1, 128], strides = [1, 1]} : vector<2x128xf32> to vector<1x128xf32>
    %cst_65 = arith.constant 0.001953125 : f32
    %94 = vector.broadcast %cst_65 : f32 to vector<1x128xf32>
    %95 = arith.mulf %93, %94 : vector<1x128xf32>
    %96 = arith.mulf %92, %92 : vector<1x128xf32>
    %97 = arith.subf %95, %96 : vector<1x128xf32>
    %c2_66 = arith.constant 2 : index
    %c0_67 = arith.constant 0 : index
    %98 = vector.load %arg3[%c2_66, %c0_67] : memref<4x128xf32, #tpu.memory_space<vmem>>, vector<1x128xf32>
    %cst_68 = arith.constant 9.99999974E-6 : f32
    %99 = vector.broadcast %cst_68 : f32 to vector<1x128xf32>
    %100 = arith.addf %97, %99 : vector<1x128xf32>
    %101 = math.rsqrt %100 : vector<1x128xf32>
    %102 = arith.mulf %98, %101 : vector<1x128xf32>
    %103 = vector.broadcast %92 : vector<1x128xf32> to vector<32x128xf32>
    %104 = arith.subf %75, %103 : vector<32x128xf32>
    %105 = vector.broadcast %102 : vector<1x128xf32> to vector<32x128xf32>
    %106 = arith.mulf %104, %105 : vector<32x128xf32>
    %c3 = arith.constant 3 : index
    %c0_69 = arith.constant 0 : index
    %107 = vector.load %arg3[%c3, %c0_69] : memref<4x128xf32, #tpu.memory_space<vmem>>, vector<1x128xf32>
    %108 = vector.broadcast %107 : vector<1x128xf32> to vector<32x128xf32>
    %109 = arith.addf %106, %108 : vector<32x128xf32>
    %cst_70 = arith.constant 0.000000e+00 : f32
    %110 = vector.broadcast %cst_70 : f32 to vector<32x128xf32>
    %111 = arith.maximumf %109, %110 : vector<32x128xf32>
    %c0_71 = arith.constant 0 : index
    %c0_72 = arith.constant 0 : index
    %112 = vector.load %arg6[%c0_71, %c0_72] : memref<32x128xf32, #tpu.memory_space<vmem>>, vector<32x128xf32>
    tpu.vector_store %arg6[%c0_71, %c0_72], %111 {strides = array<i32>} : memref<32x128xf32, #tpu.memory_space<vmem>>, vector<32x128xf32>,
    %c0_73 = arith.constant 0 : index
    %c0_74 = arith.constant 0 : index
    %c0_75 = arith.constant 0 : index
    %113 = vector.load %arg5[%c0_73, %c0_74, %c0_75] : memref<2x16x32xf32, #tpu.memory_space<vmem>>, vector<1x16x32xf32>
    %114 = vector.shape_cast %113 : vector<1x16x32xf32> to vector<16x32xf32>
    %cst_76 = arith.constant dense<0.000000e+00> : vector<16x128xf32>
    %115 = tpu.matmul %114, %111, %cst_76 {dimension_numbers = #tpu.dot_dimension_numbers<[1], [0], [0], [1], [0, 0, 1, 1], [], []>} : vector<16x32xf32>, vector<32x128xf32>, vector<16x128xf32> -> vector<16x128xf32>
    %c1_77 = arith.constant 1 : index
    %c0_78 = arith.constant 0 : index
    %c0_79 = arith.constant 0 : index
    %116 = vector.load %arg5[%c1_77, %c0_78, %c0_79] : memref<2x16x32xf32, #tpu.memory_space<vmem>>, vector<1x16x32xf32>
    %117 = vector.shape_cast %116 : vector<1x16x32xf32> to vector<16x32xf32>
    %cst_80 = arith.constant dense<0.000000e+00> : vector<16x128xf32>
    %118 = tpu.matmul %117, %111, %cst_80 {dimension_numbers = #tpu.dot_dimension_numbers<[1], [0], [0], [1], [0, 0, 1, 1], [], []>} : vector<16x32xf32>, vector<32x128xf32>, vector<16x128xf32> -> vector<16x128xf32>
    %119 = arith.maximumf %115, %118 : vector<16x128xf32>
    %c0_81 = arith.constant 0 : index
    %c0_82 = arith.constant 0 : index
    %c0_83 = arith.constant 0 : index
    %120 = vector.load %arg4[%c0_81, %c0_82, %c0_83] : memref<2x128x64xf32, #tpu.memory_space<vmem>>, vector<1x128x64xf32>
    %121 = vector.shape_cast %120 : vector<1x128x64xf32> to vector<128x64xf32>
    %cst_84 = arith.constant dense<0.000000e+00> : vector<16x64xf32>
    %122 = tpu.matmul %119, %121, %cst_84 {dimension_numbers = #tpu.dot_dimension_numbers<[1], [0], [0], [1], [0, 0, 1, 1], [], []>} : vector<16x128xf32>, vector<128x64xf32>, vector<16x64xf32> -> vector<16x64xf32>
    %c1_85 = arith.constant 1 : index
    %c0_86 = arith.constant 0 : index
    %c0_87 = arith.constant 0 : index
    %123 = vector.load %arg4[%c1_85, %c0_86, %c0_87] : memref<2x128x64xf32, #tpu.memory_space<vmem>>, vector<1x128x64xf32>
    %124 = vector.shape_cast %123 : vector<1x128x64xf32> to vector<128x64xf32>
    %cst_88 = arith.constant dense<0.000000e+00> : vector<16x64xf32>
    %125 = tpu.matmul %119, %124, %cst_88 {dimension_numbers = #tpu.dot_dimension_numbers<[1], [0], [0], [1], [0, 0, 1, 1], [], []>} : vector<16x128xf32>, vector<128x64xf32>, vector<16x64xf32> -> vector<16x64xf32>
    %126 = arith.maximumf %122, %125 : vector<16x64xf32>
    %c0_89 = arith.constant 0 : index
    %c0_90 = arith.constant 0 : index
    %127 = vector.load %arg7[%c0_89, %c0_90] : memref<16x64xf32, #tpu.memory_space<vmem>>, vector<16x64xf32>
    tpu.vector_store %arg7[%c0_89, %c0_90], %126 {strides = array<i32>} : memref<16x64xf32, #tpu.memory_space<vmem>>, vector<16x64xf32>,
    return
  }
}

</mosaic_0001>

<bundles_post_ra>
// kernel: tpu_custom_call.1
= control target key start
LH: loop header
LB: loop body
LE: loop exit
PB: predicated region body
PF: predicated region fallthrough
CT: control target
= control target key end

     0   :  { %12 = vsyncpa [#allocation4], 0  ;;  %s1236_s0 = inlined_call_operand.vmem [shape: f32[2,18,64], index: 0, kind: input, shape index: {}]   ;;  %s1237_s1 = inlined_call_operand.hbm [shape: f32[3,64,128], index: 1, kind: input, shape index: {}]   ;;  %s1238_s2 = inlined_call_operand.vmem [shape: f32[3,128,128], index: 2, kind: input, shape index: {}]   ;;  %s1239_s3 = inlined_call_operand.vmem [shape: f32[4,128], index: 3, kind: input, shape index: {}]   ;;  %s1240_s4 = inlined_call_operand.vmem [shape: f32[2,128,64], index: 4, kind: input, shape index: {}]   ;;  %s1241_s5 = inlined_call_operand.hbm [shape: f32[32,128], index: 5, kind: output, shape index: {0}]   ;;  %s1242_s6 = inlined_call_operand.hbm [shape: f32[16,64], index: 6, kind: output, shape index: {1}]  }
   0x1   :  { %13 = vsyncpa [#allocation5], 0 }
   0x2   :  { %14 = vsyncpa [#allocation8], 0  ;;  %s21_s23 = sshll.u32 %s1237_s1, 4  ;;  %s808_s24 = smov [#allocation3]   ;;  %s22_s23 = int_to_ptr.hbm [resolvable:$true] %s21_s23 }
   0x3   :  { %s23_s25 = sshll.u32 %s808_s24, 4  ;;  %s809_s26 = smov 128   ;;  %s24_s25 = int_to_ptr.vmem [resolvable:$true] %s23_s25 }
   0x4   :  { %s810_s27 = smov 8  }
   0x5   :  { %29 = dma.hbm_to_vmem [thread:$0]  %s22_s23, 3072, %s24_s25, [#allocation4], %s809_s26, %s809_s26, %s810_s27  }
   0x6   :  { %802 = dma.done.wait [#allocation4], 3072  }
   0x7   :  { %803 = vsyncadd [#allocation4], 4294964224  ;;  %v160_v0 = vld [vmem:[#allocation3 + $0xb8] sm:$0xff]  ;;  %v159_v1 = vld [vmem:[#allocation3 + $0xb0] sm:$0xff]  ;;  %vm65_vm0 = vcmask 523264   ;;  %vm228_vm1 = vcmask 1040384  }
   0x8   :  { %v64_v2 = vld [vmem:[#allocation3 + $0x78] sm:$0xff]  ;;  %181 = vmatpush.msra.mxu2 %v160_v0  ;;  %v63_v4 = vld [vmem:[#allocation3 + $0x70] sm:$0xff]  ;;  %v158_v5 = vld [vmem:[#allocation3 + $0xa8] sm:$0xff]  ;;  %s812_s28 = smov 32   ;;  %s813_s29 = smov 64  }
   0x9   :  { %86 = vmatpush.msra.mxu0 %v64_v2  ;;  %v51_v3 = vld [vmem:[#allocation3 + $0x38] sm:$0xff]  ;;  %v50_v6 = vld [vmem:[#allocation3 + $0x30] sm:$0xff]  ;;  %v62_v7 = vld [vmem:[#allocation3 + $0x68] sm:$0xff]  ;;  %s624_s15 = sshll.u32 %s1241_s5, 4  ;;  %s815_s16 = smov [#allocation6]   ;;  %s625_s15 = int_to_ptr.hbm [resolvable:$true] %s624_s15 }
   0xa   :  { %127 = vmatpush.msra.mxu1 %v51_v3  ;;  %182 = vmatpush.msra.mxu2 %v159_v1  ;;  %v49_v8 = vld [vmem:[#allocation3 + $0x28] sm:$0xff]  ;;  %v157_v9 = vld [vmem:[#allocation3 + $0xa0] sm:$0xff]  ;;  %v156_v12 = vld [vmem:[#allocation3 + $0x98] sm:$0xff]  ;;  %s622_s17 = sshll.u32 %s815_s16, 4  ;;  %s816_s18 = smov [#allocation7]   ;;  %s623_s17 = int_to_ptr.vmem [resolvable:$true] %s622_s17 }
   0xb   :  { %87 = vmatpush.msra.mxu0 %v63_v4  ;;  %v61_v10 = vld [vmem:[#allocation3 + $0x60] sm:$0xff]  ;;  %v60_v13 = vld [vmem:[#allocation3 + $0x58] sm:$0xff]  ;;  %v155_v15 = vld [vmem:[#allocation3 + $0x90] sm:$0xff]  ;;  %s635_s19 = sshll.u32 %s816_s18, 4  ;;  %s637_s21 = sshll.u32 %s1242_s6, 4  ;;  %s636_s19 = int_to_ptr.vmem [resolvable:$true] %s635_s19  ;;  %s638_s21 = int_to_ptr.hbm [resolvable:$true] %s637_s21 }
   0xc   :  { %128 = vmatpush.msra.mxu1 %v50_v6  ;;  %183 = vmatpush.msra.mxu2 %v158_v5  ;;  %v48_v11 = vld [vmem:[#allocation3 + $0x20] sm:$0xff]  ;;  %v47_v14 = vld [vmem:[#allocation3 + $0x18] sm:$0xff]  ;;  %v59_v16 = vld [vmem:[#allocation3 + $0x50] sm:$0xff] }
   0xd   :  { %88 = vmatpush.msra.mxu0 %v62_v7  ;;  %v46_v17 = vld [vmem:[#allocation3 + $0x10] sm:$0xff]  ;;  %v154_v18 = vld [vmem:[#allocation3 + $0x88] sm:$0xff]  ;;  %v153_v20 = vld [vmem:[#allocation3 + $0x80] sm:$0xff] }
   0xe   :  { %129 = vmatpush.msra.mxu1 %v49_v8  ;;  %184 = vmatpush.msra.mxu2 %v157_v9  ;;  %v58_v19 = vld [vmem:[#allocation3 + $0x48] sm:$0xff]  ;;  %v57_v22 = vld [vmem:[#allocation3 + $0x40] sm:$0xff]  ;;  %v148_v23 = vld [vmem:[%s1236_s0 + $0x2] sm:$0xff] }
   0xf   :  { %89 = vmatpush.msra.mxu0 %v61_v10  ;;  %v45_v21 = vld [vmem:[#allocation3 + $0x8] sm:$0xff]  ;;  %v44_v24 = vld [vmem:[#allocation3] sm:$0xff]  ;;  %v52_v25 = vld [vmem:[%s1236_s0 + $0x1] sm:$0xff] }
  0x10   :  { %130 = vmatpush.msra.mxu1 %v48_v11  ;;  %185 = vmatpush.msra.mxu2 %v156_v12  ;;  %v40_v26 = vld [vmem:[%s1236_s0] sm:$0xff]  ;;  %v149_v27 = vld [vmem:[%s1236_s0 + $0xa] sm:$0xff]  ;;  %v42_v32 = vld [vmem:[%s1236_s0 + $0x18] sm:$0xff] }
  0x11   :  { %90 = vmatpush.msra.mxu0 %v60_v13  ;;  %v53_v28 = vld [vmem:[%s1236_s0 + $0x9] sm:$0xff]  ;;  %v150_v30 = vld [vmem:[%s1236_s0 + $0x1a] sm:$0xff] }
  0x12   :  { %131 = vmatpush.msra.mxu1 %v47_v14  ;;  %186 = vmatpush.msra.mxu2 %v155_v15  ;;  %v41_v29 = vld [vmem:[%s1236_s0 + $0x8] sm:$0xff]  ;;  %v54_v31 = vld [vmem:[%s1236_s0 + $0x19] sm:$0xff] }
  0x13   :  { %91 = vmatpush.msra.mxu0 %v59_v16  ;;  %v151_v33 = vld [vmem:[%s1236_s0 + $0x22] sm:$0xff] }
  0x14   :  { %132 = vmatpush.msra.mxu1 %v46_v17  ;;  %187 = vmatpush.msra.mxu2 %v154_v18  ;;  %v55_v34 = vld [vmem:[%s1236_s0 + $0x21] sm:$0xff] }
  0x15   :  { %92 = vmatpush.msra.mxu0 %v58_v19  ;;  %v43_v35 = vld [vmem:[%s1236_s0 + $0x20] sm:$0xff]  ;;  %s811_s0 = smov 16  }
  0x16   :  { %133 = vmatpush.msra.mxu1 %v45_v21  ;;  %188 = vmatpush.msra.mxu2 %v153_v20  ;;  %v682_v21 = vld [vmem:[%s1238_s2 + $0xf8] sm:$0xff] }
  0x17   :  { %93 = vmatpush.msra.mxu0 %v57_v22  ;;  %663 = vmatmul.msk.f32.vlgmr.msra.gmra.mxu2 %vm65_vm0, %v148_v23  ;;  %v681_v22 = vld [vmem:[%s1238_s2 + $0xf0] sm:$0xff]  ;;  %v680_v23 = vld [vmem:[%s1238_s2 + $0xe8] sm:$0xff] }
  0x18   :  { %134 = vmatpush.msra.mxu1 %v44_v24  ;;  %655 = vmatmul.msk.f32.vlgmr.msra.gmra.mxu0 %vm65_vm0, %v52_v25  ;;  %v679_v24 = vld [vmem:[%s1238_s2 + $0xe0] sm:$0xff]  ;;  %v311_v25 = vld [vmem:[%s1238_s2 + $0x78] sm:$0xff] }
  0x19   :  { %659 = vmatmul.msk.f32.vlgmr.msra.gmra.mxu1 %vm65_vm0, %v40_v26  ;;  %333 = vmatpush.msra.mxu3 %v682_v21  ;;  %v698_v26 = vld [vmem:[%s1238_s2 + $0x178] sm:$0xff] }
  0x1a   :  { %362 = vmatpush.msrb.mxu0 %v311_v25  ;;  %412 = vmatpush.msrb.mxu1 %v698_v26 }
  0x1b   :  { %334 = vmatpush.msra.mxu3 %v681_v22 }
  0x1d   :  { %335 = vmatpush.msra.mxu3 %v680_v23  ;;  %v248_v23 = vld [vmem:[%s1239_s3] sm:$0x1] }
  0x1f   :  { %664 = vmatmul.msk.f32.gmra.mxu2 %vm65_vm0, %v149_v27  ;;  %336 = vmatpush.msra.mxu3 %v679_v24  ;;  %v678_v27 = vld [vmem:[%s1238_s2 + $0xd8] sm:$0xff] }
  0x20   :  { %656 = vmatmul.msk.f32.gmra.mxu0 %vm65_vm0, %v53_v28  ;;  %v310_v28 = vld [vmem:[%s1238_s2 + $0x70] sm:$0xff] }
  0x21   :  { %660 = vmatmul.msk.f32.gmra.mxu1 %vm65_vm0, %v41_v29  ;;  %v697_v29 = vld [vmem:[%s1238_s2 + $0x170] sm:$0xff]  ;;  %337 = vmatpush.msra.mxu3 %v678_v27 }
  0x22   :  { %363 = vmatpush.msrb.mxu0 %v310_v28  ;;  %413 = vmatpush.msrb.mxu1 %v697_v29  ;;  %v724_v29 = vld [vmem:[%s1239_s3 + $0x1] ss:$0 sm:$0xff] }
  0x27   :  { %665 = vmatmul.msk.f32.gmra.mxu2 %vm65_vm0, %v150_v30  ;;  %v677_v30 = vld [vmem:[%s1238_s2 + $0xd0] sm:$0xff] }
  0x28   :  { %657 = vmatmul.msk.f32.gmra.mxu0 %vm65_vm0, %v54_v31  ;;  %v309_v31 = vld [vmem:[%s1238_s2 + $0x68] sm:$0xff]  ;;  %338 = vmatpush.msra.mxu3 %v677_v30 }
  0x29   :  { %661 = vmatmul.msk.f32.gmra.mxu1 %vm65_vm0, %v42_v32  ;;  %v696_v32 = vld [vmem:[%s1238_s2 + $0x168] sm:$0xff]  ;;  %364 = vmatpush.msrb.mxu0 %v309_v31 }
  0x2a   :  { %414 = vmatpush.msrb.mxu1 %v696_v32 }
  0x2f   :  { %666 = vmatmul.msk.f32.gmra.mxu2 %vm65_vm0, %v151_v33  ;;  %v676_v33 = vld [vmem:[%s1238_s2 + $0xc8] sm:$0xff] }
  0x30   :  { %658 = vmatmul.msk.f32.gmra.mxu0 %vm65_vm0, %v55_v34  ;;  %v308_v34 = vld [vmem:[%s1238_s2 + $0x60] sm:$0xff]  ;;  %339 = vmatpush.msra.mxu3 %v676_v33 }
  0x31   :  { %662 = vmatmul.msk.f32.gmra.mxu1 %vm65_vm0, %v43_v35  ;;  %v695_v35 = vld [vmem:[%s1238_s2 + $0x160] sm:$0xff]  ;;  %365 = vmatpush.msrb.mxu0 %v308_v34 }
  0x32   :  { %415 = vmatpush.msrb.mxu1 %v695_v35 }
  0x95   :  { %v95_v36 = vpop.f32.mrf.mxu0 }
  0x96   :  { %v136_v37 = vpop.f32.mrf.mxu1 }
  0x97   :  { %v137_v45 = vadd.f32 %v136_v37, %v95_v36  ;;  %v675_v36 = vld [vmem:[%s1238_s2 + $0xc0] sm:$0xff]  ;;  %v307_v37 = vld [vmem:[%s1238_s2 + $0x58] sm:$0xff] }
  0x98   :  { %340 = vmatpush.msra.mxu3 %v675_v36  ;;  %366 = vmatpush.msrb.mxu0 %v307_v37 }
  0x9a   :  { %v190_v38 = vpop.f32.mrf.mxu2 }
  0x9b   :  { %v908_v49 = vadd.f32 %v190_v38, %v137_v45  ;;  %v694_v38 = vld [vmem:[%s1238_s2 + $0x158] sm:$0xff]  ;;  %v305_v45 = vld [vmem:[%s1238_s2 + $0x48] sm:$0xff] }
  0x9c   :  { %416 = vmatpush.msrb.mxu1 %v694_v38 }
  0x9d   :  { %v98_v39 = vpop.f32.mrf.mxu0  ;;  %v215_v55 = vmul.f32 %v908_v49, %v908_v49 }
  0x9e   :  { %v139_v40 = vpop.f32.mrf.mxu1 }
  0x9f   :  { %v140_v44 = vadd.f32 %v139_v40, %v98_v39  ;;  %v674_v39 = vld [vmem:[%s1238_s2 + $0xb8] sm:$0xff] }
  0xa0   :  { %341 = vmatpush.msra.mxu3 %v674_v39 }
  0xa2   :  { %v193_v41 = vpop.f32.mrf.mxu2 }
  0xa3   :  { %v906_v48 = vadd.f32 %v193_v41, %v140_v44  ;;  %v306_v41 = vld [vmem:[%s1238_s2 + $0x50] sm:$0xff] }
  0xa4   :  { %367 = vmatpush.msrb.mxu0 %v306_v41 }
  0xa5   :  { %v101_v42 = vpop.f32.mrf.mxu0  ;;  %v216_v53 = vmul.f32 %v906_v48, %v906_v48  ;;  %v206_v56 = vadd.f32 %v906_v48, %v908_v49 }
  0xa6   :  { %v142_v43 = vpop.f32.mrf.mxu1  ;;  %368 = vmatpush.msrb.mxu0 %v305_v45 }
  0xa7   :  { %v143_v46 = vadd.f32 %v142_v43, %v101_v42  ;;  %v219_v59 = vadd.f32 %v216_v53, %v215_v55  ;;  %v693_v42 = vld [vmem:[%s1238_s2 + $0x150] sm:$0xff]  ;;  %v691_v53 = vld [vmem:[%s1238_s2 + $0x140] sm:$0xff] }
  0xa8   :  { %v673_v43 = vld [vmem:[%s1238_s2 + $0xb0] sm:$0xff]  ;;  %417 = vmatpush.msrb.mxu1 %v693_v42 }
  0xa9   :  { %342 = vmatpush.msra.mxu3 %v673_v43 }
  0xaa   :  { %v196_v47 = vpop.f32.mrf.mxu2 }
  0xab   :  { %v910_v50 = vadd.f32 %v196_v47, %v143_v46  ;;  %v692_v46 = vld [vmem:[%s1238_s2 + $0x148] sm:$0xff] }
  0xac   :  { %v672_v47 = vld [vmem:[%s1238_s2 + $0xa8] sm:$0xff]  ;;  %418 = vmatpush.msrb.mxu1 %v692_v46 }
  0xad   :  { %v104_v51 = vpop.f32.mrf.mxu0  ;;  %v217_v57 = vmul.f32 %v910_v50, %v910_v50  ;;  %v207_v60 = vadd.f32 %v206_v56, %v910_v50  ;;  %343 = vmatpush.msra.mxu3 %v672_v47  ;;  %v303_v56 = vld [vmem:[%s1238_s2 + $0x38] sm:$0xff] }
  0xae   :  { %v145_v52 = vpop.f32.mrf.mxu1  ;;  %419 = vmatpush.msrb.mxu1 %v691_v53 }
  0xaf   :  { %v146_v54 = vadd.f32 %v145_v52, %v104_v51  ;;  %v220_v62 = vadd.f32 %v219_v59, %v217_v57  ;;  %v304_v52 = vld [vmem:[%s1238_s2 + $0x40] sm:$0xff]  ;;  %v690_v57 = vld [vmem:[%s1238_s2 + $0x138] sm:$0xff] }
  0xb0   :  { %369 = vmatpush.msrb.mxu0 %v304_v52  ;;  %420 = vmatpush.msrb.mxu1 %v690_v57 }
  0xb2   :  { %v199_v58 = vpop.f32.mrf.mxu2  ;;  %370 = vmatpush.msrb.mxu0 %v303_v56 }
  0xb3   :  { %v921_v61 = vadd.f32 %v199_v58, %v146_v54  ;;  %v671_v54 = vld [vmem:[%s1238_s2 + $0xa0] sm:$0xff]  ;;  %v670_v58 = vld [vmem:[%s1238_s2 + $0x98] sm:$0xff] }
  0xb4   :  { %344 = vmatpush.msra.mxu3 %v671_v54 }
  0xb5   :  { %v208_v63 = vadd.f32 %v207_v60, %v921_v61  ;;  %v218_v0 = vmul.f32 %v921_v61, %v921_v61  ;;  %v302_v60 = vld [vmem:[%s1238_s2 + $0x30] sm:$0xff] }
  0xb6   :  { %345 = vmatpush.msra.mxu3 %v670_v58  ;;  %371 = vmatpush.msrb.mxu0 %v302_v60 }
  0xb7   :  { %v209_v1 = vrot.slane %v208_v63, 4  ;;  %v221_v2 = vadd.f32 %v220_v62, %v218_v0  ;;  %v689_v62 = vld [vmem:[%s1238_s2 + $0x130] sm:$0xff] }
  0xb8   :  { %421 = vmatpush.msrb.mxu1 %v689_v62 }
  0xb9   :  { %v210_v3 = vadd.f32 %v209_v1, %v208_v63  ;;  %v222_v4 = vrot.slane %v221_v2, 4  ;;  %v669_v63 = vld [vmem:[%s1238_s2 + $0x90] sm:$0xff]  ;;  %v301_v1 = vld [vmem:[%s1238_s2 + $0x28] sm:$0xff] }
  0xba   :  { %346 = vmatpush.msra.mxu3 %v669_v63  ;;  %372 = vmatpush.msrb.mxu0 %v301_v1 }
  0xbb   :  { %v211_v5 = vrot.slane %v210_v3, 2  ;;  %v223_v6 = vadd.f32 %v222_v4, %v221_v2  ;;  %v688_v2 = vld [vmem:[%s1238_s2 + $0x128] sm:$0xff] }
  0xbc   :  { %422 = vmatpush.msrb.mxu1 %v688_v2 }
  0xbd   :  { %v212_v7 = vadd.f32 %v211_v5, %v210_v3  ;;  %v224_v8 = vrot.slane %v223_v6, 2  ;;  %v668_v3 = vld [vmem:[%s1238_s2 + $0x88] sm:$0xff]  ;;  %v300_v5 = vld [vmem:[%s1238_s2 + $0x20] sm:$0xff] }
  0xbe   :  { %347 = vmatpush.msra.mxu3 %v668_v3  ;;  %373 = vmatpush.msrb.mxu0 %v300_v5 }
  0xbf   :  { %v213_v9 = vrot.slane %v212_v7, 1  ;;  %v225_v10 = vadd.f32 %v224_v8, %v223_v6  ;;  %v687_v6 = vld [vmem:[%s1238_s2 + $0x120] sm:$0xff]  ;;  %v299_v8 = vld [vmem:[%s1238_s2 + $0x18] sm:$0xff] }
  0xc0   :  { %423 = vmatpush.msrb.mxu1 %v687_v6  ;;  %374 = vmatpush.msrb.mxu0 %v299_v8 }
  0xc1   :  { %v226_v11 = vrot.slane %v225_v10, 1  ;;  %v214_v12 = vadd.f32 %v213_v9, %v212_v7  ;;  %v667_v7 = vld [vmem:[%s1238_s2 + $0x80] sm:$0xff]  ;;  %v686_v9 = vld [vmem:[%s1238_s2 + $0x118] sm:$0xff] }
  0xc2   :  { %348 = vmatpush.msra.mxu3 %v667_v7  ;;  %424 = vmatpush.msrb.mxu1 %v686_v9 }
  0xc3   :  { %v227_v13 = vadd.f32 %v226_v11, %v225_v10  ;;  %v298_v10 = vld [vmem:[%s1238_s2 + $0x10] sm:$0xff]  ;;  %v814_v11 = vmov 0.0  }
  0xc4   :  { %284 = vst [vmem:[#allocation2] sm:$0x1] %v814_v11  ;;  %375 = vmatpush.msrb.mxu0 %v298_v10 }
  0xc5   :  { %v229_v14 = vsel %vm228_vm1, %v214_v12, %v227_v13  ;;  %v685_v12 = vld [vmem:[%s1238_s2 + $0x110] sm:$0xff]  ;;  %285 = vst [vmem:[#allocation2 + $0x18] sm:$0x1] %v814_v11  ;;  %v297_v13 = vld [vmem:[%s1238_s2 + $0x8] sm:$0xff] }
  0xc6   :  { %230 = vrot.lane.b32.xlu0 %v229_v14, %s810_s27  ;;  %286 = vst [vmem:[#allocation2 + $0x11] sm:$0x1] %v814_v11  ;;  %425 = vmatpush.msrb.mxu1 %v685_v12 }
  0xc7   :  { %287 = vst [vmem:[#allocation2 + $0x29] sm:$0x1] %v814_v11  ;;  %376 = vmatpush.msrb.mxu0 %v297_v13 }
 0x138   :  { %v231_v15 = vpop.permute.xlu0 %230 }
 0x139   :  { %v232_v16 = vadd.f32 %v231_v15, %v229_v14  ;;  %v684_v14 = vld [vmem:[%s1238_s2 + $0x108] sm:$0xff]  ;;  %v296_v15 = vld [vmem:[%s1238_s2] sm:$0xff] }
 0x13a   :  { %426 = vmatpush.msrb.mxu1 %v684_v14  ;;  %377 = vmatpush.msrb.mxu0 %v296_v15 }
 0x13b   :  { %233 = vrot.lane.b32.xlu0 %v232_v16, %s811_s0 }
 0x1ad   :  { %v234_v17 = vpop.permute.xlu0 %233 }
 0x1ae   :  { %v235_v18 = vadd.f32 %v234_v17, %v232_v16  ;;  %v683_v16 = vld [vmem:[%s1238_s2 + $0x100] sm:$0xff] }
 0x1af   :  { %427 = vmatpush.msrb.mxu1 %v683_v16 }
 0x1b0   :  { %236 = vrot.lane.b32.xlu1 %v235_v18, %s812_s28 }
 0x222   :  { %v237_v19 = vpop.permute.xlu1 %236 }
 0x223   :  { %v238_v20 = vadd.f32 %v237_v19, %v235_v18 }
 0x225   :  { %239 = vrot.lane.b32.xlu1 %v238_v20, %s813_s29 }
 0x297   :  { %v240_v40 = vpop.permute.xlu1 %239 }
 0x298   :  { %v241_v44 = vadd.f32 %v240_v40, %v238_v20 }
 0x29a   :  { %v1006_v51 = vmul.f32 0.001953125, %v241_v44 }
 0x29c   :  { %v243_v55 = vmul.f32 %v1006_v51, %v1006_v51  ;;  %v264_v25 = vperm.slane %v1006_v51, 0 }
 0x29e   :  { %v245_v59 = vrot.slane %v243_v55, 7  ;;  %v265_v28 = vsub.f32 %v908_v49, %v264_v25  ;;  %v266_v30 = vsub.f32 %v906_v48, %v264_v25  ;;  %v267_v31 = vsub.f32 %v910_v50, %v264_v25 }
 0x29f   :  { %v268_v32 = vsub.f32 %v921_v61, %v264_v25 }
 0x2a0   :  { %v247_v0 = vsub.f32 %v1006_v51, %v245_v59 }
 0x2a2   :  { %v249_v4 = vadd.f32 1e-05, %v247_v0 }
 0x2a4   :  { %726 = vrsqrt.f32 %v249_v4  ;;  %vm256_vm3 = vweird.f32 %v249_v4 }
 0x2aa   :  { %v727_v17 = vpop.eup %726 }
 0x2ab   :  { %v251_v18 = vmul.f32 %v727_v17, %v249_v4  ;;  %vm257_vm2 = vweird.f32 %v727_v17 }
 0x2ac   :  { %vm258_vm4 = vmor %vm256_vm3, %vm257_vm2 }
 0x2ad   :  { %v252_v19 = vmul.f32 %v727_v17, %v251_v18 }
 0x2af   :  { %v253_v20 = vmul.f32 0.5, %v252_v19 }
 0x2b1   :  { %v254_v21 = vsub.f32 1.5, %v253_v20 }
 0x2b3   :  { %v255_v22 = vmul.f32 %v727_v17, %v254_v21 }
 0x2b5   :  { %v259_v24 = vsel %vm258_vm4, %v727_v17, %v255_v22 }
 0x2b6   :  { %v261_v26 = vrot.slane %v259_v24, 1 }
 0x2b8   :  { %v263_v27 = vmul.f32 %v261_v26, %v248_v23 }
 0x2ba   :  { %v269_v33 = vperm.slane %v263_v27, 0 }
 0x2bc   :  { %v270_v34 = vmul.f32 %v269_v33, %v265_v28  ;;  %v271_v35 = vmul.f32 %v269_v33, %v266_v30  ;;  %v272_v36 = vmul.f32 %v269_v33, %v267_v31  ;;  %v273_v37 = vmul.f32 %v269_v33, %v268_v32 }
 0x2be   :  { %v276_v38 = vadd.f32 %v724_v29, %v270_v34  ;;  %v277_v39 = vadd.f32 %v724_v29, %v271_v35  ;;  %v278_v40 = vadd.f32 %v724_v29, %v272_v36  ;;  %v279_v41 = vadd.f32 %v724_v29, %v273_v37 }
 0x2c0   :  { %v280_v49 = vmax.f32 %v276_v38, 0.0  ;;  %v281_v42 = vmax.f32 %v277_v39, 0.0  ;;  %v282_v43 = vmax.f32 %v278_v40, 0.0  ;;  %v283_v44 = vmax.f32 %v279_v41, 0.0  ;;  %v550_v39 = vld [vmem:[%s1240_s4 + $0x78] sm:$0xff]  ;;  %v549_v41 = vld [vmem:[%s1240_s4 + $0x70] sm:$0xff] }
 0x2c1   :  { %v714_v40 = vld [vmem:[%s1240_s4 + $0xf8] sm:$0xff]  ;;  %551 = vmatpush.msrb.mxu2 %v550_v39 }
 0x2c2   :  { %288 = vst [vmem:[#allocation2 + $0x1] sm:$0xff] %v280_v49  ;;  %349 = vmatmul.f32.vlgmr.msra.gmra.mxu3 %v280_v49  ;;  %v713_v49 = vld [vmem:[%s1240_s4 + $0xf0] sm:$0xff] }
 0x2c3   :  { %289 = vst [vmem:[#allocation2 + $0x9] sm:$0xff] %v281_v42  ;;  %591 = vmatpush.msrb.mxu3 %v714_v40  ;;  %552 = vmatpush.msrb.mxu2 %v549_v41 }
 0x2c4   :  { %290 = vst [vmem:[#allocation2 + $0x19] sm:$0xff] %v282_v43 }
 0x2c5   :  { %291 = vst [vmem:[#allocation2 + $0x21] sm:$0xff] %v283_v44  ;;  %592 = vmatpush.msrb.mxu3 %v713_v49 }
 0x2c9   :  { %v292_v48 = vld [vmem:[#allocation2] sm:$0xff] }
 0x2ca   :  { %378 = vmatmul.f32.vlgmr.msrb.gmra.mxu0 %v292_v48  ;;  %v391_v50 = vld [vmem:[#allocation2 + $0x2] sm:$0xff]  ;;  %352 = vmatmul.f32.gmra.mxu3 %v281_v42  ;;  %v392_v45 = vld [vmem:[#allocation2 + $0xa] sm:$0xff] }
 0x2cb   :  { %428 = vmatmul.f32.vlgmr.msrb.gmra.mxu1 %v391_v50  ;;  %v293_v61 = vld [vmem:[#allocation2 + $0x8] sm:$0xff]  ;;  %v294_v46 = vld [vmem:[#allocation2 + $0x18] sm:$0xff]  ;;  %v711_v48 = vld [vmem:[%s1240_s4 + $0xe0] sm:$0xff] }
 0x2cc   :  { %v393_v47 = vld [vmem:[#allocation2 + $0x1a] sm:$0xff]  ;;  %v394_v52 = vld [vmem:[#allocation2 + $0x22] sm:$0xff] }
 0x2cd   :  { %v295_v51 = vld [vmem:[#allocation2 + $0x20] sm:$0xff]  ;;  %v548_v42 = vld [vmem:[%s1240_s4 + $0x68] sm:$0xff] }
 0x2ce   :  { %553 = vmatpush.msrb.mxu2 %v548_v42 }
 0x2d2   :  { %381 = vmatmul.f32.gmra.mxu0 %v293_v61  ;;  %355 = vmatmul.f32.gmra.mxu3 %v282_v43  ;;  %v712_v43 = vld [vmem:[%s1240_s4 + $0xe8] sm:$0xff]  ;;  %v546_v61 = vld [vmem:[%s1240_s4 + $0x58] sm:$0xff] }
 0x2d3   :  { %431 = vmatmul.f32.gmra.mxu1 %v392_v45  ;;  %593 = vmatpush.msrb.mxu3 %v712_v43  ;;  %v710_v45 = vld [vmem:[%s1240_s4 + $0xd8] sm:$0xff] }
 0x2d5   :  { %594 = vmatpush.msrb.mxu3 %v711_v48 }
 0x2d7   :  { %595 = vmatpush.msrb.mxu3 %v710_v45 }
 0x2da   :  { %384 = vmatmul.f32.gmra.mxu0 %v294_v46  ;;  %358 = vmatmul.f32.gmra.mxu3 %v283_v44  ;;  %v547_v44 = vld [vmem:[%s1240_s4 + $0x60] sm:$0xff] }
 0x2db   :  { %434 = vmatmul.f32.gmra.mxu1 %v393_v47  ;;  %554 = vmatpush.msrb.mxu2 %v547_v44  ;;  %v545_v47 = vld [vmem:[%s1240_s4 + $0x50] sm:$0xff] }
 0x2dd   :  { %555 = vmatpush.msrb.mxu2 %v546_v61 }
 0x2df   :  { %556 = vmatpush.msrb.mxu2 %v545_v47 }
 0x2e2   :  { %387 = vmatmul.f32.gmra.mxu0 %v295_v51  ;;  %v709_v51 = vld [vmem:[%s1240_s4 + $0xd0] sm:$0xff] }
 0x2e3   :  { %437 = vmatmul.f32.gmra.mxu1 %v394_v52  ;;  %596 = vmatpush.msrb.mxu3 %v709_v51 }
 0x345   :  { %v350_v53 = vpop.f32.mrf.mxu3 }
 0x347   :  { %v379_v54 = vpop.f32.mrf.mxu0 }
 0x348   :  { %v429_v55 = vpop.f32.mrf.mxu1  ;;  %v380_v63 = vadd.f32 %v379_v54, %v350_v53  ;;  %v544_v53 = vld [vmem:[%s1240_s4 + $0x48] sm:$0xff] }
 0x349   :  { %v708_v54 = vld [vmem:[%s1240_s4 + $0xc8] sm:$0xff]  ;;  %557 = vmatpush.msrb.mxu2 %v544_v53 }
 0x34a   :  { %v1093_v3 = vadd.f32 %v429_v55, %v380_v63  ;;  %597 = vmatpush.msrb.mxu3 %v708_v54  ;;  %v541_v63 = vld [vmem:[%s1240_s4 + $0x30] sm:$0xff] }
 0x34c   :  { %v454_v8 = vmul.f32 %v1093_v3, %v1093_v3 }
 0x34d   :  { %v353_v56 = vpop.f32.mrf.mxu3 }
 0x34f   :  { %v382_v57 = vpop.f32.mrf.mxu0 }
 0x350   :  { %v432_v58 = vpop.f32.mrf.mxu1  ;;  %v383_v60 = vadd.f32 %v382_v57, %v353_v56  ;;  %v543_v56 = vld [vmem:[%s1240_s4 + $0x40] sm:$0xff] }
 0x351   :  { %v707_v57 = vld [vmem:[%s1240_s4 + $0xc0] sm:$0xff]  ;;  %558 = vmatpush.msrb.mxu2 %v543_v56 }
 0x352   :  { %v1091_v2 = vadd.f32 %v432_v58, %v383_v60  ;;  %598 = vmatpush.msrb.mxu3 %v707_v57  ;;  %v706_v60 = vld [vmem:[%s1240_s4 + $0xb8] sm:$0xff] }
 0x354   :  { %v455_v5 = vmul.f32 %v1091_v2, %v1091_v2  ;;  %v445_v9 = vadd.f32 %v1091_v2, %v1093_v3  ;;  %599 = vmatpush.msrb.mxu3 %v706_v60 }
 0x355   :  { %v356_v59 = vpop.f32.mrf.mxu3 }
 0x356   :  { %v458_v13 = vadd.f32 %v455_v5, %v454_v8  ;;  %v540_v5 = vld [vmem:[%s1240_s4 + $0x28] sm:$0xff]  ;;  %v703_v8 = vld [vmem:[%s1240_s4 + $0xa0] sm:$0xff] }
 0x357   :  { %v385_v62 = vpop.f32.mrf.mxu0 }
 0x358   :  { %v435_v0 = vpop.f32.mrf.mxu1  ;;  %v386_v1 = vadd.f32 %v385_v62, %v356_v59  ;;  %v542_v59 = vld [vmem:[%s1240_s4 + $0x38] sm:$0xff] }
 0x359   :  { %559 = vmatpush.msrb.mxu2 %v542_v59 }
 0x35a   :  { %v1095_v4 = vadd.f32 %v435_v0, %v386_v1  ;;  %v705_v0 = vld [vmem:[%s1240_s4 + $0xb0] sm:$0xff] }
 0x35b   :  { %560 = vmatpush.msrb.mxu2 %v541_v63  ;;  %600 = vmatpush.msrb.mxu3 %v705_v0 }
 0x35c   :  { %v456_v10 = vmul.f32 %v1095_v4, %v1095_v4  ;;  %v446_v14 = vadd.f32 %v445_v9, %v1095_v4  ;;  %v538_v9 = vld [vmem:[%s1240_s4 + $0x18] sm:$0xff] }
 0x35d   :  { %v359_v7 = vpop.f32.mrf.mxu3  ;;  %561 = vmatpush.msrb.mxu2 %v540_v5 }
 0x35e   :  { %v459_v16 = vadd.f32 %v458_v13, %v456_v10  ;;  %v702_v10 = vld [vmem:[%s1240_s4 + $0x98] sm:$0xff]  ;;  %v536_v13 = vld [vmem:[%s1240_s4 + $0x8] sm:$0xff] }
 0x35f   :  { %v388_v6 = vpop.f32.mrf.mxu0 }
 0x360   :  { %v389_v11 = vadd.f32 %v388_v6, %v359_v7  ;;  %v438_v12 = vpop.f32.mrf.mxu1  ;;  %v704_v6 = vld [vmem:[%s1240_s4 + $0xa8] sm:$0xff]  ;;  %v539_v7 = vld [vmem:[%s1240_s4 + $0x20] sm:$0xff] }
 0x361   :  { %601 = vmatpush.msrb.mxu3 %v704_v6  ;;  %562 = vmatpush.msrb.mxu2 %v539_v7 }
 0x362   :  { %v1106_v15 = vadd.f32 %v438_v12, %v389_v11  ;;  %v537_v11 = vld [vmem:[%s1240_s4 + $0x10] sm:$0xff] }
 0x363   :  { %602 = vmatpush.msrb.mxu3 %v703_v8  ;;  %v701_v12 = vld [vmem:[%s1240_s4 + $0x90] sm:$0xff]  ;;  %563 = vmatpush.msrb.mxu2 %v538_v9 }
 0x364   :  { %v447_v17 = vadd.f32 %v446_v14, %v1106_v15  ;;  %v457_v18 = vmul.f32 %v1106_v15, %v1106_v15  ;;  %v700_v14 = vld [vmem:[%s1240_s4 + $0x88] sm:$0xff] }
 0x365   :  { %603 = vmatpush.msrb.mxu3 %v702_v10  ;;  %564 = vmatpush.msrb.mxu2 %v537_v11 }
 0x366   :  { %v448_v19 = vrot.slane %v447_v17, 4  ;;  %v460_v20 = vadd.f32 %v459_v16, %v457_v18  ;;  %v535_v18 = vld [vmem:[%s1240_s4] sm:$0xff] }
 0x367   :  { %604 = vmatpush.msrb.mxu3 %v701_v12  ;;  %565 = vmatpush.msrb.mxu2 %v536_v13 }
 0x368   :  { %v449_v21 = vadd.f32 %v448_v19, %v447_v17  ;;  %v461_v22 = vrot.slane %v460_v20, 4  ;;  %v699_v19 = vld [vmem:[%s1240_s4 + $0x80] sm:$0xff] }
 0x369   :  { %605 = vmatpush.msrb.mxu3 %v700_v14  ;;  %566 = vmatpush.msrb.mxu2 %v535_v18 }
 0x36a   :  { %v450_v23 = vrot.slane %v449_v21, 2  ;;  %v462_v24 = vadd.f32 %v461_v22, %v460_v20 }
 0x36b   :  { %606 = vmatpush.msrb.mxu3 %v699_v19 }
 0x36c   :  { %v451_v25 = vadd.f32 %v450_v23, %v449_v21  ;;  %v463_v26 = vrot.slane %v462_v24, 2 }
 0x36e   :  { %v452_v27 = vrot.slane %v451_v25, 1  ;;  %v464_v28 = vadd.f32 %v463_v26, %v462_v24  ;;  %v486_v24 = vld [vmem:[%s1239_s3 + $0x2] sm:$0x1] }
 0x370   :  { %v465_v29 = vrot.slane %v464_v28, 1  ;;  %v453_v30 = vadd.f32 %v452_v27, %v451_v25 }
 0x372   :  { %v466_v31 = vadd.f32 %v465_v29, %v464_v28 }
 0x374   :  { %v467_v32 = vsel %vm228_vm1, %v453_v30, %v466_v31  ;;  %v725_v30 = vld [vmem:[%s1239_s3 + $0x3] ss:$0 sm:$0xff] }
 0x375   :  { %468 = vrot.lane.b32.xlu2 %v467_v32, %s810_s27 }
 0x3cf   :  { %v469_v33 = vpop.permute.xlu2 %468 }
 0x3d0   :  { %v470_v34 = vadd.f32 %v469_v33, %v467_v32 }
 0x3d2   :  { %471 = vrot.lane.b32.xlu2 %v470_v34, %s811_s0 }
 0x42c   :  { %v472_v35 = vpop.permute.xlu2 %471 }
 0x42d   :  { %v473_v36 = vadd.f32 %v472_v35, %v470_v34 }
 0x42f   :  { %474 = vrot.lane.b32.xlu0 %v473_v36, %s812_s28 }
 0x4a1   :  { %v475_v37 = vpop.permute.xlu0 %474 }
 0x4a2   :  { %v476_v38 = vadd.f32 %v475_v37, %v473_v36 }
 0x4a4   :  { %477 = vrot.lane.b32.xlu1 %v476_v38, %s813_s29 }
 0x516   :  { %v478_v50 = vpop.permute.xlu1 %477 }
 0x517   :  { %v479_v46 = vadd.f32 %v478_v50, %v476_v38 }
 0x519   :  { %v480_v52 = vmul.f32 0.001953125, %v479_v46 }
 0x51b   :  { %v481_v55 = vmul.f32 %v480_v52, %v480_v52  ;;  %v502_v26 = vperm.slane %v480_v52, 0 }
 0x51d   :  { %v483_v58 = vrot.slane %v481_v55, 7  ;;  %v503_v29 = vsub.f32 %v1093_v3, %v502_v26  ;;  %v504_v31 = vsub.f32 %v1091_v2, %v502_v26  ;;  %v505_v32 = vsub.f32 %v1095_v4, %v502_v26 }
 0x51e   :  { %v506_v33 = vsub.f32 %v1106_v15, %v502_v26 }
 0x51f   :  { %v485_v62 = vsub.f32 %v480_v52, %v483_v58 }
 0x521   :  { %v487_v1 = vadd.f32 1e-05, %v485_v62 }
 0x523   :  { %728 = vrsqrt.f32 %v487_v1  ;;  %vm494_vm6 = vweird.f32 %v487_v1 }
 0x529   :  { %v729_v16 = vpop.eup %728 }
 0x52a   :  { %v489_v17 = vmul.f32 %v729_v16, %v487_v1  ;;  %vm495_vm5 = vweird.f32 %v729_v16 }
 0x52b   :  { %vm496_vm7 = vmor %vm494_vm6, %vm495_vm5 }
 0x52c   :  { %v490_v20 = vmul.f32 %v729_v16, %v489_v17 }
 0x52e   :  { %v491_v21 = vmul.f32 0.5, %v490_v20 }
 0x530   :  { %v492_v22 = vsub.f32 1.5, %v491_v21 }
 0x532   :  { %v493_v23 = vmul.f32 %v729_v16, %v492_v22 }
 0x534   :  { %v497_v25 = vsel %vm496_vm7, %v729_v16, %v493_v23 }
 0x535   :  { %v499_v27 = vrot.slane %v497_v25, 1 }
 0x537   :  { %v501_v28 = vmul.f32 %v499_v27, %v486_v24 }
 0x539   :  { %v507_v34 = vperm.slane %v501_v28, 0 }
 0x53b   :  { %v508_v35 = vmul.f32 %v507_v34, %v503_v29  ;;  %v509_v36 = vmul.f32 %v507_v34, %v504_v31  ;;  %v510_v37 = vmul.f32 %v507_v34, %v505_v32  ;;  %v511_v38 = vmul.f32 %v507_v34, %v506_v33 }
 0x53d   :  { %v514_v39 = vadd.f32 %v725_v30, %v508_v35  ;;  %v515_v40 = vadd.f32 %v725_v30, %v509_v36  ;;  %v516_v41 = vadd.f32 %v725_v30, %v510_v37  ;;  %v517_v49 = vadd.f32 %v725_v30, %v511_v38 }
 0x53f   :  { %v518_v3 = vmax.f32 %v514_v39, 0.0  ;;  %v519_v42 = vmax.f32 %v515_v40, 0.0  ;;  %v520_v43 = vmax.f32 %v516_v41, 0.0  ;;  %v521_v44 = vmax.f32 %v517_v49, 0.0 }
 0x541   :  { %522 = vst [vmem:[#allocation6] sm:$0xff] %v518_v3 }
 0x542   :  { %523 = vst [vmem:[#allocation6 + $0x8] sm:$0xff] %v519_v42 }
 0x543   :  { %524 = vst [vmem:[#allocation6 + $0x10] sm:$0xff] %v520_v43 }
 0x544   :  { %525 = vst [vmem:[#allocation6 + $0x18] sm:$0xff] %v521_v44 }
 0x545   :  { %630 = dma.vmem_to_hbm [thread:$0]  %s623_s17, 512, %s625_s15, [#allocation5], %s809_s26, %s809_s26, %s810_s27  }
 0x549   :  { %v526_v2 = vld [vmem:[#allocation6] ss:$2 sm:$0xff]  ;;  %v530_v4 = vld [vmem:[#allocation6 + $0x1] ss:$2 sm:$0xff] }
 0x54a   :  { %v533_v15 = vmax.f32 %v526_v2, %v530_v4 }
 0x54b   :  { %v528_v48 = vld [vmem:[#allocation6 + $0x10] ss:$2 sm:$0xff]  ;;  %v532_v50 = vld [vmem:[#allocation6 + $0x11] ss:$2 sm:$0xff] }
 0x54c   :  { %567 = vmatmul.f32.vlgmr.msrb.gmra.mxu2 %v533_v15  ;;  %607 = vmatmul.f32.vlgmr.msrb.gmra.mxu3 %v533_v15  ;;  %v534_v61 = vmax.f32 %v528_v48, %v532_v50 }
 0x554   :  { %570 = vmatmul.f32.gmra.mxu2 %v534_v61  ;;  %610 = vmatmul.f32.gmra.mxu3 %v534_v61 }
 0x5cf   :  { %v568_v45 = vpop.f32.mrf.mxu2  ;;  %v608_v46 = vpop.f32.mrf.mxu3 }
 0x5d0   :  { %v614_v47 = vmax.f32 %v568_v45, %v608_v46 }
 0x5d2   :  { %616 = vst.msk [vmem:[#allocation7] sm:$0xff] %vm65_vm0, %v614_v47 }
 0x5d7   :  { %v571_v51 = vpop.f32.mrf.mxu2  ;;  %v611_v52 = vpop.f32.mrf.mxu3 }
 0x5d8   :  { %v615_v53 = vmax.f32 %v571_v51, %v611_v52 }
 0x5da   :  { %617 = vst.msk [vmem:[#allocation7 + $0x8] sm:$0xff] %vm65_vm0, %v615_v53 }
 0x5db   :  { %643 = dma.vmem_to_hbm [thread:$0]  %s636_s19, 256, %s638_s21, [#allocation8], %s809_s26, %s809_s26, %s810_s27  }
 0x5dc   :  { %804 = dma.done.wait [#allocation5], 512  }
 0x5dd   :  { %805 = vsyncadd [#allocation5], 4294966784 }
 0x5de   :  { %806 = dma.done.wait [#allocation8], 256  }
 0x5df   :  { %807 = vsyncadd [#allocation8], 4294967040 }
 0x5e0   :  { %652 = vsyncpa [#allocation4], 1 }
 0x5e1   :  { %653 = vsyncpa [#allocation5], 1 }
 0x5e2   :  { %654 = vsyncpa [#allocation8], 1 }

// kernel: tpu_custom_call.1
= control target key start
LH: loop header
LB: loop body
LE: loop exit
PB: predicated region body
PF: predicated region fallthrough
CT: control target
= control target key end

     0   :  { %13 = vsyncpa [#allocation4], 0  ;;  %s1333_s0 = inlined_call_operand.vmem [shape: f32[2,18,64], index: 0, kind: input, shape index: {}]   ;;  %s1334_s1 = inlined_call_operand.hbm [shape: f32[3,64,128], index: 1, kind: input, shape index: {}]   ;;  %s1335_s2 = inlined_call_operand.vmem [shape: f32[3,128,128], index: 2, kind: input, shape index: {}]   ;;  %s1336_s3 = inlined_call_operand.vmem [shape: f32[4,128], index: 3, kind: input, shape index: {}]   ;;  %s1337_s4 = inlined_call_operand.vmem [shape: f32[2,128,64], index: 4, kind: input, shape index: {}]   ;;  %s1338_s5 = inlined_call_operand.vmem [shape: f32[2,16,32], index: 5, kind: input, shape index: {}]   ;;  %s1339_s6 = inlined_call_operand.hbm [shape: f32[32,128], index: 6, kind: output, shape index: {0}]   ;;  %s1340_s7 = inlined_call_operand.hbm [shape: f32[16,64], index: 7, kind: output, shape index: {1}]  }
   0x1   :  { %14 = vsyncpa [#allocation5], 0 }
   0x2   :  { %15 = vsyncpa [#allocation8], 0  ;;  %s22_s26 = sshll.u32 %s1334_s1, 4  ;;  %s890_s27 = smov [#allocation3]   ;;  %s23_s26 = int_to_ptr.hbm [resolvable:$true] %s22_s26 }
   0x3   :  { %s24_s28 = sshll.u32 %s890_s27, 4  ;;  %s891_s29 = smov 128   ;;  %s25_s28 = int_to_ptr.vmem [resolvable:$true] %s24_s28 }
   0x4   :  { %s892_s30 = smov 8  }
   0x5   :  { %30 = dma.hbm_to_vmem [thread:$0]  %s23_s26, 3072, %s25_s28, [#allocation4], %s891_s29, %s891_s29, %s892_s30  }
   0x6   :  { %884 = dma.done.wait [#allocation4], 3072  }
   0x7   :  { %885 = vsyncadd [#allocation4], 4294964224  ;;  %v163_v0 = vld [vmem:[#allocation3 + $0xb8] sm:$0xff]  ;;  %v162_v1 = vld [vmem:[#allocation3 + $0xb0] sm:$0xff]  ;;  %vm68_vm0 = vcmask 523264   ;;  %vm231_vm1 = vcmask 1040384  }
   0x8   :  { %v67_v2 = vld [vmem:[#allocation3 + $0x78] sm:$0xff]  ;;  %184 = vmatpush.msra.mxu2 %v163_v0  ;;  %v66_v4 = vld [vmem:[#allocation3 + $0x70] sm:$0xff]  ;;  %v161_v5 = vld [vmem:[#allocation3 + $0xa8] sm:$0xff]  ;;  %s894_s9 = smov 32   ;;  %s895_s10 = smov 64   ;;  %vm531_vm8 = vcmask 261120  }
   0x9   :  { %89 = vmatpush.msra.mxu0 %v67_v2  ;;  %v54_v3 = vld [vmem:[#allocation3 + $0x38] sm:$0xff]  ;;  %v53_v6 = vld [vmem:[#allocation3 + $0x30] sm:$0xff]  ;;  %v65_v7 = vld [vmem:[#allocation3 + $0x68] sm:$0xff]  ;;  %s898_s8 = smov [#allocation7]   ;;  %s697_s13 = sshll.u32 %s1340_s7, 4  ;;  %s698_s13 = int_to_ptr.hbm [resolvable:$true] %s697_s13 }
   0xa   :  { %130 = vmatpush.msra.mxu1 %v54_v3  ;;  %185 = vmatpush.msra.mxu2 %v162_v1  ;;  %v52_v8 = vld [vmem:[#allocation3 + $0x28] sm:$0xff]  ;;  %v160_v9 = vld [vmem:[#allocation3 + $0xa0] sm:$0xff]  ;;  %v159_v12 = vld [vmem:[#allocation3 + $0x98] sm:$0xff] }
   0xb   :  { %90 = vmatpush.msra.mxu0 %v66_v4  ;;  %v64_v10 = vld [vmem:[#allocation3 + $0x60] sm:$0xff]  ;;  %v63_v13 = vld [vmem:[#allocation3 + $0x58] sm:$0xff]  ;;  %v158_v15 = vld [vmem:[#allocation3 + $0x90] sm:$0xff] }
   0xc   :  { %131 = vmatpush.msra.mxu1 %v53_v6  ;;  %186 = vmatpush.msra.mxu2 %v161_v5  ;;  %v51_v11 = vld [vmem:[#allocation3 + $0x20] sm:$0xff]  ;;  %v50_v14 = vld [vmem:[#allocation3 + $0x18] sm:$0xff]  ;;  %v62_v16 = vld [vmem:[#allocation3 + $0x50] sm:$0xff] }
   0xd   :  { %91 = vmatpush.msra.mxu0 %v65_v7  ;;  %v49_v17 = vld [vmem:[#allocation3 + $0x10] sm:$0xff]  ;;  %v157_v18 = vld [vmem:[#allocation3 + $0x88] sm:$0xff]  ;;  %v156_v20 = vld [vmem:[#allocation3 + $0x80] sm:$0xff] }
   0xe   :  { %132 = vmatpush.msra.mxu1 %v52_v8  ;;  %187 = vmatpush.msra.mxu2 %v160_v9  ;;  %v61_v19 = vld [vmem:[#allocation3 + $0x48] sm:$0xff]  ;;  %v60_v22 = vld [vmem:[#allocation3 + $0x40] sm:$0xff]  ;;  %v151_v23 = vld [vmem:[%s1333_s0 + $0x2] sm:$0xff] }
   0xf   :  { %92 = vmatpush.msra.mxu0 %v64_v10  ;;  %v48_v21 = vld [vmem:[#allocation3 + $0x8] sm:$0xff]  ;;  %v47_v24 = vld [vmem:[#allocation3] sm:$0xff]  ;;  %v55_v25 = vld [vmem:[%s1333_s0 + $0x1] sm:$0xff] }
  0x10   :  { %133 = vmatpush.msra.mxu1 %v51_v11  ;;  %188 = vmatpush.msra.mxu2 %v159_v12  ;;  %v43_v26 = vld [vmem:[%s1333_s0] sm:$0xff]  ;;  %v152_v27 = vld [vmem:[%s1333_s0 + $0xa] sm:$0xff]  ;;  %v45_v32 = vld [vmem:[%s1333_s0 + $0x18] sm:$0xff] }
  0x11   :  { %93 = vmatpush.msra.mxu0 %v63_v13  ;;  %v56_v28 = vld [vmem:[%s1333_s0 + $0x9] sm:$0xff]  ;;  %v153_v30 = vld [vmem:[%s1333_s0 + $0x1a] sm:$0xff] }
  0x12   :  { %134 = vmatpush.msra.mxu1 %v50_v14  ;;  %189 = vmatpush.msra.mxu2 %v158_v15  ;;  %v44_v29 = vld [vmem:[%s1333_s0 + $0x8] sm:$0xff]  ;;  %v57_v31 = vld [vmem:[%s1333_s0 + $0x19] sm:$0xff] }
  0x13   :  { %94 = vmatpush.msra.mxu0 %v62_v16  ;;  %v154_v33 = vld [vmem:[%s1333_s0 + $0x22] sm:$0xff] }
  0x14   :  { %135 = vmatpush.msra.mxu1 %v49_v17  ;;  %190 = vmatpush.msra.mxu2 %v157_v18  ;;  %v58_v34 = vld [vmem:[%s1333_s0 + $0x21] sm:$0xff] }
  0x15   :  { %95 = vmatpush.msra.mxu0 %v61_v19  ;;  %v46_v35 = vld [vmem:[%s1333_s0 + $0x20] sm:$0xff]  ;;  %s893_s0 = smov 16  }
  0x16   :  { %136 = vmatpush.msra.mxu1 %v48_v21  ;;  %191 = vmatpush.msra.mxu2 %v156_v20  ;;  %v742_v21 = vld [vmem:[%s1335_s2 + $0xf8] sm:$0xff] }
  0x17   :  { %96 = vmatpush.msra.mxu0 %v60_v22  ;;  %723 = vmatmul.msk.f32.vlgmr.msra.gmra.mxu2 %vm68_vm0, %v151_v23  ;;  %v741_v22 = vld [vmem:[%s1335_s2 + $0xf0] sm:$0xff]  ;;  %v740_v23 = vld [vmem:[%s1335_s2 + $0xe8] sm:$0xff] }
  0x18   :  { %137 = vmatpush.msra.mxu1 %v47_v24  ;;  %715 = vmatmul.msk.f32.vlgmr.msra.gmra.mxu0 %vm68_vm0, %v55_v25  ;;  %v739_v24 = vld [vmem:[%s1335_s2 + $0xe0] sm:$0xff]  ;;  %v314_v25 = vld [vmem:[%s1335_s2 + $0x78] sm:$0xff] }
  0x19   :  { %719 = vmatmul.msk.f32.vlgmr.msra.gmra.mxu1 %vm68_vm0, %v43_v26  ;;  %336 = vmatpush.msra.mxu3 %v742_v21  ;;  %v758_v26 = vld [vmem:[%s1335_s2 + $0x178] sm:$0xff] }
  0x1a   :  { %365 = vmatpush.msrb.mxu0 %v314_v25  ;;  %415 = vmatpush.msrb.mxu1 %v758_v26 }
  0x1b   :  { %337 = vmatpush.msra.mxu3 %v741_v22 }
  0x1d   :  { %338 = vmatpush.msra.mxu3 %v740_v23  ;;  %v251_v23 = vld [vmem:[%s1336_s3] sm:$0x1] }
  0x1f   :  { %724 = vmatmul.msk.f32.gmra.mxu2 %vm68_vm0, %v152_v27  ;;  %339 = vmatpush.msra.mxu3 %v739_v24  ;;  %v738_v27 = vld [vmem:[%s1335_s2 + $0xd8] sm:$0xff] }
  0x20   :  { %716 = vmatmul.msk.f32.gmra.mxu0 %vm68_vm0, %v56_v28  ;;  %v313_v28 = vld [vmem:[%s1335_s2 + $0x70] sm:$0xff] }
  0x21   :  { %720 = vmatmul.msk.f32.gmra.mxu1 %vm68_vm0, %v44_v29  ;;  %v757_v29 = vld [vmem:[%s1335_s2 + $0x170] sm:$0xff]  ;;  %340 = vmatpush.msra.mxu3 %v738_v27 }
  0x22   :  { %366 = vmatpush.msrb.mxu0 %v313_v28  ;;  %416 = vmatpush.msrb.mxu1 %v757_v29  ;;  %v806_v29 = vld [vmem:[%s1336_s3 + $0x1] ss:$0 sm:$0xff] }
  0x27   :  { %725 = vmatmul.msk.f32.gmra.mxu2 %vm68_vm0, %v153_v30  ;;  %v737_v30 = vld [vmem:[%s1335_s2 + $0xd0] sm:$0xff] }
  0x28   :  { %717 = vmatmul.msk.f32.gmra.mxu0 %vm68_vm0, %v57_v31  ;;  %v312_v31 = vld [vmem:[%s1335_s2 + $0x68] sm:$0xff]  ;;  %341 = vmatpush.msra.mxu3 %v737_v30 }
  0x29   :  { %721 = vmatmul.msk.f32.gmra.mxu1 %vm68_vm0, %v45_v32  ;;  %v756_v32 = vld [vmem:[%s1335_s2 + $0x168] sm:$0xff]  ;;  %367 = vmatpush.msrb.mxu0 %v312_v31 }
  0x2a   :  { %417 = vmatpush.msrb.mxu1 %v756_v32 }
  0x2f   :  { %726 = vmatmul.msk.f32.gmra.mxu2 %vm68_vm0, %v154_v33  ;;  %v736_v33 = vld [vmem:[%s1335_s2 + $0xc8] sm:$0xff] }
  0x30   :  { %718 = vmatmul.msk.f32.gmra.mxu0 %vm68_vm0, %v58_v34  ;;  %v311_v34 = vld [vmem:[%s1335_s2 + $0x60] sm:$0xff]  ;;  %342 = vmatpush.msra.mxu3 %v736_v33 }
  0x31   :  { %722 = vmatmul.msk.f32.gmra.mxu1 %vm68_vm0, %v46_v35  ;;  %v755_v35 = vld [vmem:[%s1335_s2 + $0x160] sm:$0xff]  ;;  %368 = vmatpush.msrb.mxu0 %v311_v34 }
  0x32   :  { %418 = vmatpush.msrb.mxu1 %v755_v35 }
  0x95   :  { %v98_v36 = vpop.f32.mrf.mxu0 }
  0x96   :  { %v139_v37 = vpop.f32.mrf.mxu1 }
  0x97   :  { %v140_v45 = vadd.f32 %v139_v37, %v98_v36  ;;  %v735_v36 = vld [vmem:[%s1335_s2 + $0xc0] sm:$0xff]  ;;  %v310_v37 = vld [vmem:[%s1335_s2 + $0x58] sm:$0xff] }
  0x98   :  { %343 = vmatpush.msra.mxu3 %v735_v36  ;;  %369 = vmatpush.msrb.mxu0 %v310_v37 }
  0x9a   :  { %v193_v38 = vpop.f32.mrf.mxu2 }
  0x9b   :  { %v995_v49 = vadd.f32 %v193_v38, %v140_v45  ;;  %v754_v38 = vld [vmem:[%s1335_s2 + $0x158] sm:$0xff]  ;;  %v308_v45 = vld [vmem:[%s1335_s2 + $0x48] sm:$0xff] }
  0x9c   :  { %419 = vmatpush.msrb.mxu1 %v754_v38 }
  0x9d   :  { %v101_v39 = vpop.f32.mrf.mxu0  ;;  %v218_v55 = vmul.f32 %v995_v49, %v995_v49 }
  0x9e   :  { %v142_v40 = vpop.f32.mrf.mxu1 }
  0x9f   :  { %v143_v44 = vadd.f32 %v142_v40, %v101_v39  ;;  %v734_v39 = vld [vmem:[%s1335_s2 + $0xb8] sm:$0xff] }
  0xa0   :  { %344 = vmatpush.msra.mxu3 %v734_v39 }
  0xa2   :  { %v196_v41 = vpop.f32.mrf.mxu2 }
  0xa3   :  { %v993_v48 = vadd.f32 %v196_v41, %v143_v44  ;;  %v309_v41 = vld [vmem:[%s1335_s2 + $0x50] sm:$0xff] }
  0xa4   :  { %370 = vmatpush.msrb.mxu0 %v309_v41 }
  0xa5   :  { %v104_v42 = vpop.f32.mrf.mxu0  ;;  %v219_v53 = vmul.f32 %v993_v48, %v993_v48  ;;  %v209_v56 = vadd.f32 %v993_v48, %v995_v49 }
  0xa6   :  { %v145_v43 = vpop.f32.mrf.mxu1  ;;  %371 = vmatpush.msrb.mxu0 %v308_v45 }
  0xa7   :  { %v146_v46 = vadd.f32 %v145_v43, %v104_v42  ;;  %v222_v59 = vadd.f32 %v219_v53, %v218_v55  ;;  %v753_v42 = vld [vmem:[%s1335_s2 + $0x150] sm:$0xff]  ;;  %v751_v53 = vld [vmem:[%s1335_s2 + $0x140] sm:$0xff] }
  0xa8   :  { %v733_v43 = vld [vmem:[%s1335_s2 + $0xb0] sm:$0xff]  ;;  %420 = vmatpush.msrb.mxu1 %v753_v42 }
  0xa9   :  { %345 = vmatpush.msra.mxu3 %v733_v43 }
  0xaa   :  { %v199_v47 = vpop.f32.mrf.mxu2 }
  0xab   :  { %v997_v50 = vadd.f32 %v199_v47, %v146_v46  ;;  %v752_v46 = vld [vmem:[%s1335_s2 + $0x148] sm:$0xff] }
  0xac   :  { %v732_v47 = vld [vmem:[%s1335_s2 + $0xa8] sm:$0xff]  ;;  %421 = vmatpush.msrb.mxu1 %v752_v46 }
  0xad   :  { %v107_v51 = vpop.f32.mrf.mxu0  ;;  %v220_v57 = vmul.f32 %v997_v50, %v997_v50  ;;  %v210_v60 = vadd.f32 %v209_v56, %v997_v50  ;;  %346 = vmatpush.msra.mxu3 %v732_v47  ;;  %v306_v56 = vld [vmem:[%s1335_s2 + $0x38] sm:$0xff] }
  0xae   :  { %v148_v52 = vpop.f32.mrf.mxu1  ;;  %422 = vmatpush.msrb.mxu1 %v751_v53 }
  0xaf   :  { %v149_v54 = vadd.f32 %v148_v52, %v107_v51  ;;  %v223_v62 = vadd.f32 %v222_v59, %v220_v57  ;;  %v307_v52 = vld [vmem:[%s1335_s2 + $0x40] sm:$0xff]  ;;  %v750_v57 = vld [vmem:[%s1335_s2 + $0x138] sm:$0xff] }
  0xb0   :  { %372 = vmatpush.msrb.mxu0 %v307_v52  ;;  %423 = vmatpush.msrb.mxu1 %v750_v57 }
  0xb2   :  { %v202_v58 = vpop.f32.mrf.mxu2  ;;  %373 = vmatpush.msrb.mxu0 %v306_v56 }
  0xb3   :  { %v1008_v61 = vadd.f32 %v202_v58, %v149_v54  ;;  %v731_v54 = vld [vmem:[%s1335_s2 + $0xa0] sm:$0xff]  ;;  %v730_v58 = vld [vmem:[%s1335_s2 + $0x98] sm:$0xff] }
  0xb4   :  { %347 = vmatpush.msra.mxu3 %v731_v54 }
  0xb5   :  { %v211_v63 = vadd.f32 %v210_v60, %v1008_v61  ;;  %v221_v0 = vmul.f32 %v1008_v61, %v1008_v61  ;;  %v305_v60 = vld [vmem:[%s1335_s2 + $0x30] sm:$0xff] }
  0xb6   :  { %348 = vmatpush.msra.mxu3 %v730_v58  ;;  %374 = vmatpush.msrb.mxu0 %v305_v60 }
  0xb7   :  { %v212_v1 = vrot.slane %v211_v63, 4  ;;  %v224_v2 = vadd.f32 %v223_v62, %v221_v0  ;;  %v749_v62 = vld [vmem:[%s1335_s2 + $0x130] sm:$0xff] }
  0xb8   :  { %424 = vmatpush.msrb.mxu1 %v749_v62 }
  0xb9   :  { %v213_v3 = vadd.f32 %v212_v1, %v211_v63  ;;  %v225_v4 = vrot.slane %v224_v2, 4  ;;  %v729_v63 = vld [vmem:[%s1335_s2 + $0x90] sm:$0xff]  ;;  %v304_v1 = vld [vmem:[%s1335_s2 + $0x28] sm:$0xff] }
  0xba   :  { %349 = vmatpush.msra.mxu3 %v729_v63  ;;  %375 = vmatpush.msrb.mxu0 %v304_v1 }
  0xbb   :  { %v214_v5 = vrot.slane %v213_v3, 2  ;;  %v226_v6 = vadd.f32 %v225_v4, %v224_v2  ;;  %v748_v2 = vld [vmem:[%s1335_s2 + $0x128] sm:$0xff] }
  0xbc   :  { %425 = vmatpush.msrb.mxu1 %v748_v2 }
  0xbd   :  { %v215_v7 = vadd.f32 %v214_v5, %v213_v3  ;;  %v227_v8 = vrot.slane %v226_v6, 2  ;;  %v728_v3 = vld [vmem:[%s1335_s2 + $0x88] sm:$0xff]  ;;  %v303_v5 = vld [vmem:[%s1335_s2 + $0x20] sm:$0xff] }
  0xbe   :  { %350 = vmatpush.msra.mxu3 %v728_v3  ;;  %376 = vmatpush.msrb.mxu0 %v303_v5 }
  0xbf   :  { %v216_v9 = vrot.slane %v215_v7, 1  ;;  %v228_v10 = vadd.f32 %v227_v8, %v226_v6  ;;  %v747_v6 = vld [vmem:[%s1335_s2 + $0x120] sm:$0xff]  ;;  %v302_v8 = vld [vmem:[%s1335_s2 + $0x18] sm:$0xff] }
  0xc0   :  { %426 = vmatpush.msrb.mxu1 %v747_v6  ;;  %377 = vmatpush.msrb.mxu0 %v302_v8 }
  0xc1   :  { %v229_v11 = vrot.slane %v228_v10, 1  ;;  %v217_v12 = vadd.f32 %v216_v9, %v215_v7  ;;  %v727_v7 = vld [vmem:[%s1335_s2 + $0x80] sm:$0xff]  ;;  %v746_v9 = vld [vmem:[%s1335_s2 + $0x118] sm:$0xff] }
  0xc2   :  { %351 = vmatpush.msra.mxu3 %v727_v7  ;;  %427 = vmatpush.msrb.mxu1 %v746_v9 }
  0xc3   :  { %v230_v13 = vadd.f32 %v229_v11, %v228_v10  ;;  %v301_v10 = vld [vmem:[%s1335_s2 + $0x10] sm:$0xff]  ;;  %v896_v11 = vmov 0.0  }
  0xc4   :  { %287 = vst [vmem:[#allocation2] sm:$0x1] %v896_v11  ;;  %378 = vmatpush.msrb.mxu0 %v301_v10 }
  0xc5   :  { %v232_v14 = vsel %vm231_vm1, %v217_v12, %v230_v13  ;;  %v745_v12 = vld [vmem:[%s1335_s2 + $0x110] sm:$0xff]  ;;  %288 = vst [vmem:[#allocation2 + $0x18] sm:$0x1] %v896_v11  ;;  %v300_v13 = vld [vmem:[%s1335_s2 + $0x8] sm:$0xff] }
  0xc6   :  { %233 = vrot.lane.b32.xlu0 %v232_v14, %s892_s30  ;;  %289 = vst [vmem:[#allocation2 + $0x11] sm:$0x1] %v896_v11  ;;  %428 = vmatpush.msrb.mxu1 %v745_v12 }
  0xc7   :  { %290 = vst [vmem:[#allocation2 + $0x29] sm:$0x1] %v896_v11  ;;  %379 = vmatpush.msrb.mxu0 %v300_v13 }
 0x138   :  { %v234_v15 = vpop.permute.xlu0 %233 }
 0x139   :  { %v235_v16 = vadd.f32 %v234_v15, %v232_v14  ;;  %v744_v14 = vld [vmem:[%s1335_s2 + $0x108] sm:$0xff]  ;;  %v299_v15 = vld [vmem:[%s1335_s2] sm:$0xff] }
 0x13a   :  { %429 = vmatpush.msrb.mxu1 %v744_v14  ;;  %380 = vmatpush.msrb.mxu0 %v299_v15 }
 0x13b   :  { %236 = vrot.lane.b32.xlu0 %v235_v16, %s893_s0 }
 0x1ad   :  { %v237_v17 = vpop.permute.xlu0 %236 }
 0x1ae   :  { %v238_v18 = vadd.f32 %v237_v17, %v235_v16  ;;  %v743_v16 = vld [vmem:[%s1335_s2 + $0x100] sm:$0xff] }
 0x1af   :  { %430 = vmatpush.msrb.mxu1 %v743_v16 }
 0x1b0   :  { %239 = vrot.lane.b32.xlu1 %v238_v18, %s894_s9 }
 0x222   :  { %v240_v19 = vpop.permute.xlu1 %239 }
 0x223   :  { %v241_v20 = vadd.f32 %v240_v19, %v238_v18 }
 0x225   :  { %242 = vrot.lane.b32.xlu1 %v241_v20, %s895_s10 }
 0x297   :  { %v243_v40 = vpop.permute.xlu1 %242 }
 0x298   :  { %v244_v44 = vadd.f32 %v243_v40, %v241_v20 }
 0x29a   :  { %v1093_v51 = vmul.f32 0.001953125, %v244_v44 }
 0x29c   :  { %v246_v55 = vmul.f32 %v1093_v51, %v1093_v51  ;;  %v267_v25 = vperm.slane %v1093_v51, 0 }
 0x29e   :  { %v248_v59 = vrot.slane %v246_v55, 7  ;;  %v268_v28 = vsub.f32 %v995_v49, %v267_v25  ;;  %v269_v30 = vsub.f32 %v993_v48, %v267_v25  ;;  %v270_v31 = vsub.f32 %v997_v50, %v267_v25 }
 0x29f   :  { %v271_v32 = vsub.f32 %v1008_v61, %v267_v25 }
 0x2a0   :  { %v250_v0 = vsub.f32 %v1093_v51, %v248_v59 }
 0x2a2   :  { %v252_v4 = vadd.f32 1e-05, %v250_v0 }
 0x2a4   :  { %808 = vrsqrt.f32 %v252_v4  ;;  %vm259_vm3 = vweird.f32 %v252_v4 }
 0x2aa   :  { %v809_v17 = vpop.eup %808 }
 0x2ab   :  { %v254_v18 = vmul.f32 %v809_v17, %v252_v4  ;;  %vm260_vm2 = vweird.f32 %v809_v17 }
 0x2ac   :  { %vm261_vm4 = vmor %vm259_vm3, %vm260_vm2 }
 0x2ad   :  { %v255_v19 = vmul.f32 %v809_v17, %v254_v18 }
 0x2af   :  { %v256_v20 = vmul.f32 0.5, %v255_v19 }
 0x2b1   :  { %v257_v21 = vsub.f32 1.5, %v256_v20 }
 0x2b3   :  { %v258_v22 = vmul.f32 %v809_v17, %v257_v21 }
 0x2b5   :  { %v262_v24 = vsel %vm261_vm4, %v809_v17, %v258_v22 }
 0x2b6   :  { %v264_v26 = vrot.slane %v262_v24, 1 }
 0x2b8   :  { %v266_v27 = vmul.f32 %v264_v26, %v251_v23 }
 0x2ba   :  { %v272_v33 = vperm.slane %v266_v27, 0 }
 0x2bc   :  { %v273_v34 = vmul.f32 %v272_v33, %v268_v28  ;;  %v274_v35 = vmul.f32 %v272_v33, %v269_v30  ;;  %v275_v36 = vmul.f32 %v272_v33, %v270_v31  ;;  %v276_v37 = vmul.f32 %v272_v33, %v271_v32 }
 0x2be   :  { %v279_v38 = vadd.f32 %v806_v29, %v273_v34  ;;  %v280_v39 = vadd.f32 %v806_v29, %v274_v35  ;;  %v281_v40 = vadd.f32 %v806_v29, %v275_v36  ;;  %v282_v41 = vadd.f32 %v806_v29, %v276_v37 }
 0x2c0   :  { %v283_v49 = vmax.f32 %v279_v38, 0.0  ;;  %v284_v42 = vmax.f32 %v280_v39, 0.0  ;;  %v285_v43 = vmax.f32 %v281_v40, 0.0  ;;  %v286_v44 = vmax.f32 %v282_v41, 0.0 }
 0x2c2   :  { %291 = vst [vmem:[#allocation2 + $0x1] sm:$0xff] %v283_v49  ;;  %352 = vmatmul.f32.vlgmr.msra.gmra.mxu3 %v283_v49 }
 0x2c3   :  { %292 = vst [vmem:[#allocation2 + $0x9] sm:$0xff] %v284_v42 }
 0x2c4   :  { %293 = vst [vmem:[#allocation2 + $0x19] sm:$0xff] %v285_v43 }
 0x2c5   :  { %294 = vst [vmem:[#allocation2 + $0x21] sm:$0xff] %v286_v44 }
 0x2c9   :  { %v295_v48 = vld [vmem:[#allocation2] sm:$0xff] }
 0x2ca   :  { %381 = vmatmul.f32.vlgmr.msrb.gmra.mxu0 %v295_v48  ;;  %v394_v50 = vld [vmem:[#allocation2 + $0x2] sm:$0xff]  ;;  %355 = vmatmul.f32.gmra.mxu3 %v284_v42  ;;  %v395_v45 = vld [vmem:[#allocation2 + $0xa] sm:$0xff] }
 0x2cb   :  { %431 = vmatmul.f32.vlgmr.msrb.gmra.mxu1 %v394_v50  ;;  %v296_v61 = vld [vmem:[#allocation2 + $0x8] sm:$0xff]  ;;  %v297_v46 = vld [vmem:[#allocation2 + $0x18] sm:$0xff] }
 0x2cc   :  { %v396_v47 = vld [vmem:[#allocation2 + $0x1a] sm:$0xff]  ;;  %v397_v52 = vld [vmem:[#allocation2 + $0x22] sm:$0xff] }
 0x2cd   :  { %v298_v51 = vld [vmem:[#allocation2 + $0x20] sm:$0xff] }
 0x2d2   :  { %384 = vmatmul.f32.gmra.mxu0 %v296_v61  ;;  %358 = vmatmul.f32.gmra.mxu3 %v285_v43 }
 0x2d3   :  { %434 = vmatmul.f32.gmra.mxu1 %v395_v45 }
 0x2da   :  { %387 = vmatmul.f32.gmra.mxu0 %v297_v46  ;;  %361 = vmatmul.f32.gmra.mxu3 %v286_v44 }
 0x2db   :  { %437 = vmatmul.f32.gmra.mxu1 %v396_v47 }
 0x2e2   :  { %390 = vmatmul.f32.gmra.mxu0 %v298_v51 }
 0x2e3   :  { %440 = vmatmul.f32.gmra.mxu1 %v397_v52 }
 0x345   :  { %v353_v53 = vpop.f32.mrf.mxu3 }
 0x347   :  { %v382_v54 = vpop.f32.mrf.mxu0 }
 0x348   :  { %v432_v55 = vpop.f32.mrf.mxu1  ;;  %v383_v63 = vadd.f32 %v382_v54, %v353_v53  ;;  %v489_v53 = vld [vmem:[%s1336_s3 + $0x2] sm:$0x1] }
 0x34a   :  { %v1180_v3 = vadd.f32 %v432_v55, %v383_v63 }
 0x34c   :  { %v457_v8 = vmul.f32 %v1180_v3, %v1180_v3 }
 0x34d   :  { %v356_v56 = vpop.f32.mrf.mxu3 }
 0x34f   :  { %v385_v57 = vpop.f32.mrf.mxu0 }
 0x350   :  { %v435_v58 = vpop.f32.mrf.mxu1  ;;  %v386_v60 = vadd.f32 %v385_v57, %v356_v56 }
 0x352   :  { %v1178_v2 = vadd.f32 %v435_v58, %v386_v60  ;;  %v807_v58 = vld [vmem:[%s1336_s3 + $0x3] ss:$0 sm:$0xff]  ;;  %s695_s3 = sshll.u32 %s898_s8, 4  ;;  %s696_s3 = int_to_ptr.vmem [resolvable:$true] %s695_s3 }
 0x354   :  { %v458_v5 = vmul.f32 %v1178_v2, %v1178_v2  ;;  %v448_v9 = vadd.f32 %v1178_v2, %v1180_v3 }
 0x355   :  { %v359_v59 = vpop.f32.mrf.mxu3 }
 0x356   :  { %v461_v13 = vadd.f32 %v458_v5, %v457_v8 }
 0x357   :  { %v388_v62 = vpop.f32.mrf.mxu0 }
 0x358   :  { %v438_v0 = vpop.f32.mrf.mxu1  ;;  %v389_v1 = vadd.f32 %v388_v62, %v359_v59 }
 0x35a   :  { %v1182_v4 = vadd.f32 %v438_v0, %v389_v1 }
 0x35c   :  { %v459_v10 = vmul.f32 %v1182_v4, %v1182_v4  ;;  %v449_v14 = vadd.f32 %v448_v9, %v1182_v4 }
 0x35d   :  { %v362_v7 = vpop.f32.mrf.mxu3 }
 0x35e   :  { %v462_v16 = vadd.f32 %v461_v13, %v459_v10 }
 0x35f   :  { %v391_v6 = vpop.f32.mrf.mxu0 }
 0x360   :  { %v392_v11 = vadd.f32 %v391_v6, %v362_v7  ;;  %v441_v12 = vpop.f32.mrf.mxu1 }
 0x362   :  { %v447_v15 = vadd.f32 %v441_v12, %v392_v11 }
 0x364   :  { %v450_v17 = vadd.f32 %v449_v14, %v447_v15  ;;  %v460_v18 = vmul.f32 %v447_v15, %v447_v15  ;;  %v608_v14 = vld [vmem:[%s1337_s4 + $0x68] sm:$0xff] }
 0x366   :  { %v451_v19 = vrot.slane %v450_v17, 4  ;;  %v463_v20 = vadd.f32 %v462_v16, %v460_v18  ;;  %v778_v16 = vld [vmem:[%s1337_s4 + $0xe8] sm:$0xff]  ;;  %v529_v18 = vld [vmem:[%s1338_s5] sm:$0xff] }
 0x368   :  { %v452_v21 = vadd.f32 %v451_v19, %v450_v17  ;;  %v464_v22 = vrot.slane %v463_v20, 4  ;;  %v607_v17 = vld [vmem:[%s1337_s4 + $0x60] sm:$0xff]  ;;  %v606_v19 = vld [vmem:[%s1337_s4 + $0x58] sm:$0xff] }
 0x36a   :  { %v453_v23 = vrot.slane %v452_v21, 2  ;;  %v465_v24 = vadd.f32 %v464_v22, %v463_v20  ;;  %v605_v20 = vld [vmem:[%s1337_s4 + $0x50] sm:$0xff] }
 0x36b   :  { %v761_v22 = vld [vmem:[%s1338_s5 + $0x10] sm:$0xff] }
 0x36c   :  { %v454_v25 = vadd.f32 %v453_v23, %v452_v21  ;;  %v466_v26 = vrot.slane %v465_v24, 2  ;;  %v530_v21 = vld [vmem:[%s1338_s5 + $0x8] sm:$0xff]  ;;  %v762_v23 = vld [vmem:[%s1338_s5 + $0x18] sm:$0xff] }
 0x36e   :  { %v455_v27 = vrot.slane %v454_v25, 1  ;;  %v467_v28 = vadd.f32 %v466_v26, %v465_v24  ;;  %v777_v24 = vld [vmem:[%s1337_s4 + $0xe0] sm:$0xff]  ;;  %v775_v26 = vld [vmem:[%s1337_s4 + $0xd0] sm:$0xff] }
 0x370   :  { %v468_v29 = vrot.slane %v467_v28, 1  ;;  %v456_v30 = vadd.f32 %v455_v27, %v454_v25  ;;  %v776_v25 = vld [vmem:[%s1337_s4 + $0xd8] sm:$0xff]  ;;  %v604_v27 = vld [vmem:[%s1337_s4 + $0x48] sm:$0xff] }
 0x372   :  { %v469_v31 = vadd.f32 %v468_v29, %v467_v28  ;;  %v603_v28 = vld [vmem:[%s1337_s4 + $0x40] sm:$0xff]  ;;  %v774_v29 = vld [vmem:[%s1337_s4 + $0xc8] sm:$0xff] }
 0x374   :  { %v470_v32 = vsel %vm231_vm1, %v456_v30, %v469_v31  ;;  %v602_v30 = vld [vmem:[%s1337_s4 + $0x38] sm:$0xff]  ;;  %v773_v31 = vld [vmem:[%s1337_s4 + $0xc0] sm:$0xff] }
 0x375   :  { %471 = vrot.lane.b32.xlu2 %v470_v32, %s892_s30 }
 0x3cf   :  { %v472_v33 = vpop.permute.xlu2 %471 }
 0x3d0   :  { %v473_v34 = vadd.f32 %v472_v33, %v470_v32  ;;  %v601_v32 = vld [vmem:[%s1337_s4 + $0x30] sm:$0xff]  ;;  %v772_v33 = vld [vmem:[%s1337_s4 + $0xb8] sm:$0xff] }
 0x3d2   :  { %474 = vrot.lane.b32.xlu2 %v473_v34, %s893_s0 }
 0x42c   :  { %v475_v35 = vpop.permute.xlu2 %474 }
 0x42d   :  { %v476_v36 = vadd.f32 %v475_v35, %v473_v34  ;;  %v771_v34 = vld [vmem:[%s1337_s4 + $0xb0] sm:$0xff]  ;;  %v600_v35 = vld [vmem:[%s1337_s4 + $0x28] sm:$0xff] }
 0x42f   :  { %477 = vrot.lane.b32.xlu0 %v476_v36, %s894_s9  ;;  %s684_s9 = sshll.u32 %s1339_s6, 4  ;;  %s685_s9 = int_to_ptr.hbm [resolvable:$true] %s684_s9 }
 0x4a1   :  { %v478_v37 = vpop.permute.xlu0 %477 }
 0x4a2   :  { %v479_v38 = vadd.f32 %v478_v37, %v476_v36  ;;  %v599_v36 = vld [vmem:[%s1337_s4 + $0x20] sm:$0xff]  ;;  %v770_v37 = vld [vmem:[%s1337_s4 + $0xa8] sm:$0xff] }
 0x4a4   :  { %480 = vrot.lane.b32.xlu1 %v479_v38, %s895_s10  ;;  %s897_s10 = smov [#allocation6]  }
 0x516   :  { %v481_v39 = vpop.permute.xlu1 %480 }
 0x517   :  { %v482_v40 = vadd.f32 %v481_v39, %v479_v38  ;;  %v598_v38 = vld [vmem:[%s1337_s4 + $0x18] sm:$0xff]  ;;  %v769_v39 = vld [vmem:[%s1337_s4 + $0xa0] sm:$0xff] }
 0x519   :  { %v483_v41 = vmul.f32 0.001953125, %v482_v40  ;;  %v597_v40 = vld [vmem:[%s1337_s4 + $0x10] sm:$0xff] }
 0x51b   :  { %v484_v49 = vmul.f32 %v483_v41, %v483_v41  ;;  %v505_v52 = vperm.slane %v483_v41, 0 }
 0x51d   :  { %v486_v42 = vrot.slane %v484_v49, 7  ;;  %v509_v56 = vsub.f32 %v447_v15, %v505_v52  ;;  %v508_v59 = vsub.f32 %v1182_v4, %v505_v52  ;;  %v507_v60 = vsub.f32 %v1178_v2, %v505_v52  ;;  %v610_v2 = vld [vmem:[%s1337_s4 + $0x78] sm:$0xff]  ;;  %v779_v15 = vld [vmem:[%s1337_s4 + $0xf0] sm:$0xff] }
 0x51e   :  { %v506_v62 = vsub.f32 %v1180_v3, %v505_v52  ;;  %v609_v3 = vld [vmem:[%s1337_s4 + $0x70] sm:$0xff]  ;;  %611 = vmatpush.msrb.mxu3 %v610_v2  ;;  %v780_v4 = vld [vmem:[%s1337_s4 + $0xf8] sm:$0xff] }
 0x51f   :  { %v488_v43 = vsub.f32 %v483_v41, %v486_v42  ;;  %651 = vmatpush.msra.mxu0 %v780_v4  ;;  %781 = vmatpush.msra.mxu1 %v780_v4  ;;  %v768_v41 = vld [vmem:[%s1337_s4 + $0x98] sm:$0xff]  ;;  %v767_v49 = vld [vmem:[%s1337_s4 + $0x90] sm:$0xff]  ;;  %v596_v42 = vld [vmem:[%s1337_s4 + $0x8] sm:$0xff] }
 0x520   :  { %612 = vmatpush.msrb.mxu3 %v609_v3 }
 0x521   :  { %v490_v44 = vadd.f32 1e-05, %v488_v43  ;;  %652 = vmatpush.msra.mxu0 %v779_v15  ;;  %782 = vmatpush.msra.mxu1 %v779_v15  ;;  %v595_v43 = vld [vmem:[%s1337_s4] sm:$0xff] }
 0x522   :  { %613 = vmatpush.msrb.mxu3 %v608_v14 }
 0x523   :  { %810 = vrsqrt.f32 %v490_v44  ;;  %vm497_vm6 = vweird.f32 %v490_v44  ;;  %653 = vmatpush.msra.mxu0 %v778_v16  ;;  %783 = vmatpush.msra.mxu1 %v778_v16 }
 0x524   :  { %614 = vmatpush.msrb.mxu3 %v607_v17 }
 0x525   :  { %654 = vmatpush.msra.mxu0 %v777_v24  ;;  %784 = vmatpush.msra.mxu1 %v777_v24 }
 0x526   :  { %615 = vmatpush.msrb.mxu3 %v606_v19 }
 0x527   :  { %655 = vmatpush.msra.mxu0 %v776_v25  ;;  %785 = vmatpush.msra.mxu1 %v776_v25 }
 0x528   :  { %616 = vmatpush.msrb.mxu3 %v605_v20 }
 0x529   :  { %v811_v48 = vpop.eup %810  ;;  %656 = vmatpush.msra.mxu0 %v775_v26  ;;  %786 = vmatpush.msra.mxu1 %v775_v26 }
 0x52a   :  { %v492_v50 = vmul.f32 %v811_v48, %v490_v44  ;;  %vm498_vm5 = vweird.f32 %v811_v48  ;;  %617 = vmatpush.msrb.mxu3 %v604_v27  ;;  %v766_v44 = vld [vmem:[%s1337_s4 + $0x88] sm:$0xff] }
 0x52b   :  { %vm499_vm7 = vmor %vm497_vm6, %vm498_vm5  ;;  %657 = vmatpush.msra.mxu0 %v774_v29  ;;  %787 = vmatpush.msra.mxu1 %v774_v29 }
 0x52c   :  { %v493_v61 = vmul.f32 %v811_v48, %v492_v50  ;;  %618 = vmatpush.msrb.mxu3 %v603_v28 }
 0x52d   :  { %658 = vmatpush.msra.mxu0 %v773_v31  ;;  %788 = vmatpush.msra.mxu1 %v773_v31 }
 0x52e   :  { %v494_v45 = vmul.f32 0.5, %v493_v61  ;;  %619 = vmatpush.msrb.mxu3 %v602_v30 }
 0x52f   :  { %659 = vmatpush.msra.mxu0 %v772_v33  ;;  %789 = vmatpush.msra.mxu1 %v772_v33 }
 0x530   :  { %v495_v46 = vsub.f32 1.5, %v494_v45  ;;  %620 = vmatpush.msrb.mxu3 %v601_v32 }
 0x531   :  { %660 = vmatpush.msra.mxu0 %v771_v34  ;;  %790 = vmatpush.msra.mxu1 %v771_v34 }
 0x532   :  { %v496_v47 = vmul.f32 %v811_v48, %v495_v46  ;;  %621 = vmatpush.msrb.mxu3 %v600_v35 }
 0x533   :  { %661 = vmatpush.msra.mxu0 %v770_v37  ;;  %791 = vmatpush.msra.mxu1 %v770_v37 }
 0x534   :  { %v500_v51 = vsel %vm499_vm7, %v811_v48, %v496_v47  ;;  %622 = vmatpush.msrb.mxu3 %v599_v36  ;;  %v765_v48 = vld [vmem:[%s1337_s4 + $0x80] sm:$0xff]  ;;  %s682_s4 = sshll.u32 %s897_s10, 4  ;;  %s683_s4 = int_to_ptr.vmem [resolvable:$true] %s682_s4 }
 0x535   :  { %v502_v54 = vrot.slane %v500_v51, 1  ;;  %662 = vmatpush.msra.mxu0 %v769_v39  ;;  %792 = vmatpush.msra.mxu1 %v769_v39 }
 0x536   :  { %623 = vmatpush.msrb.mxu3 %v598_v38 }
 0x537   :  { %v504_v55 = vmul.f32 %v502_v54, %v489_v53  ;;  %663 = vmatpush.msra.mxu0 %v768_v41  ;;  %793 = vmatpush.msra.mxu1 %v768_v41 }
 0x538   :  { %624 = vmatpush.msrb.mxu3 %v597_v40 }
 0x539   :  { %v510_v57 = vperm.slane %v504_v55, 0  ;;  %664 = vmatpush.msra.mxu0 %v767_v49  ;;  %794 = vmatpush.msra.mxu1 %v767_v49 }
 0x53a   :  { %625 = vmatpush.msrb.mxu3 %v596_v42 }
 0x53b   :  { %v514_v63 = vmul.f32 %v510_v57, %v509_v56  ;;  %v513_v0 = vmul.f32 %v510_v57, %v508_v59  ;;  %v512_v1 = vmul.f32 %v510_v57, %v507_v60  ;;  %v511_v5 = vmul.f32 %v510_v57, %v506_v62  ;;  %665 = vmatpush.msra.mxu0 %v766_v44 }
 0x53c   :  { %795 = vmatpush.msra.mxu1 %v766_v44  ;;  %626 = vmatpush.msrb.mxu3 %v595_v43 }
 0x53d   :  { %v520_v6 = vadd.f32 %v807_v58, %v514_v63  ;;  %v519_v7 = vadd.f32 %v807_v58, %v513_v0  ;;  %v518_v8 = vadd.f32 %v807_v58, %v512_v1  ;;  %v517_v9 = vadd.f32 %v807_v58, %v511_v5  ;;  %666 = vmatpush.msra.mxu0 %v765_v48 }
 0x53e   :  { %796 = vmatpush.msra.mxu1 %v765_v48 }
 0x53f   :  { %v524_v10 = vmax.f32 %v520_v6, 0.0  ;;  %v523_v11 = vmax.f32 %v519_v7, 0.0  ;;  %v522_v12 = vmax.f32 %v518_v8, 0.0  ;;  %v521_v13 = vmax.f32 %v517_v9, 0.0 }
 0x541   :  { %528 = vst [vmem:[#allocation6 + $0x18] sm:$0xff] %v524_v10  ;;  %550 = vmatpush.msrb.mxu2 %v524_v10 }
 0x542   :  { %527 = vst [vmem:[#allocation6 + $0x10] sm:$0xff] %v523_v11 }
 0x543   :  { %551 = vmatpush.msrb.mxu2 %v523_v11  ;;  %526 = vst [vmem:[#allocation6 + $0x8] sm:$0xff] %v522_v12 }
 0x544   :  { %525 = vst [vmem:[#allocation6] sm:$0xff] %v521_v13 }
 0x545   :  { %552 = vmatpush.msrb.mxu2 %v522_v12  ;;  %690 = dma.vmem_to_hbm [thread:$0]  %s683_s4, 512, %s685_s9, [#allocation5], %s891_s29, %s891_s29, %s892_s30  }
 0x547   :  { %553 = vmatpush.msrb.mxu2 %v521_v13 }
 0x548   :  { %759 = vmatmul.msk.f32.vlgmr.msrb.gmra.mxu2 %vm531_vm8, %v529_v18 }
 0x549   :  { %582 = vmatpush.msra.mxu2 %v524_v10 }
 0x54b   :  { %583 = vmatpush.msra.mxu2 %v523_v11 }
 0x54d   :  { %584 = vmatpush.msra.mxu2 %v522_v12 }
 0x54f   :  { %585 = vmatpush.msra.mxu2 %v521_v13 }
 0x550   :  { %760 = vmatmul.msk.f32.gmra.mxu2 %vm531_vm8, %v530_v21 }
 0x558   :  { %763 = vmatmul.msk.f32.vlgmr.msra.gmra.mxu2 %vm531_vm8, %v761_v22 }
 0x560   :  { %764 = vmatmul.msk.f32.gmra.mxu2 %vm531_vm8, %v762_v23 }
 0x5cb   :  { %v555_v50 = vpop.f32.mrf.mxu2 }
 0x5d3   :  { %v558_v61 = vpop.f32.mrf.mxu2 }
 0x5db   :  { %v587_v45 = vpop.f32.mrf.mxu2 }
 0x5dc   :  { %v593_v46 = vmax.f32 %v555_v50, %v587_v45 }
 0x5de   :  { %627 = vmatmul.f32.vlgmr.msrb.gmra.mxu3 %v593_v46  ;;  %667 = vmatmul.f32.vlgmr.msra.gmra.mxu0 %v593_v46 }
 0x5e3   :  { %v590_v47 = vpop.f32.mrf.mxu2 }
 0x5e4   :  { %v594_v51 = vmax.f32 %v558_v61, %v590_v47 }
 0x5e6   :  { %630 = vmatmul.f32.gmra.mxu3 %v594_v51  ;;  %670 = vmatmul.f32.vlgmr.msra.gmra.mxu1 %v594_v51 }
 0x65b   :  { %v668_v53 = vpop.f32.mrf.mxu0 }
 0x661   :  { %v628_v52 = vpop.f32.mrf.mxu3 }
 0x662   :  { %v674_v54 = vmax.f32 %v628_v52, %v668_v53 }
 0x663   :  { %v671_v56 = vpop.f32.mrf.mxu1 }
 0x664   :  { %676 = vst.msk [vmem:[#allocation7] sm:$0xff] %vm68_vm0, %v674_v54 }
 0x669   :  { %v631_v55 = vpop.f32.mrf.mxu3 }
 0x66a   :  { %v675_v57 = vmax.f32 %v631_v55, %v671_v56 }
 0x66c   :  { %677 = vst.msk [vmem:[#allocation7 + $0x8] sm:$0xff] %vm68_vm0, %v675_v57 }
 0x66d   :  { %703 = dma.vmem_to_hbm [thread:$0]  %s696_s3, 256, %s698_s13, [#allocation8], %s891_s29, %s891_s29, %s892_s30  }
 0x66e   :  { %886 = dma.done.wait [#allocation5], 512  }
 0x66f   :  { %887 = vsyncadd [#allocation5], 4294966784 }
 0x670   :  { %888 = dma.done.wait [#allocation8], 256  }
 0x671   :  { %889 = vsyncadd [#allocation8], 4294967040 }
 0x672   :  { %712 = vsyncpa [#allocation4], 1 }
 0x673   :  { %713 = vsyncpa [#allocation5], 1 }
 0x674   :  { %714 = vsyncpa [#allocation8], 1 }

</bundles_post_ra>
